<compile_context>
chip_gen: v6e
topology: v6e:2x2x1
jax: 0.10.0
libtpu: 0.0.40
codegen_flags: <defaults>
</compile_context>

<pallas_src>
import functools

import jax
import jax.numpy as jnp
import numpy as np
from jax.experimental import pallas as pl
from jax.experimental.pallas import tpu as pltpu


def _round_up(x, m):
    return ((x + m - 1) // m) * m


def _lane_tile(x, reps):
    """Replicate x (..., d) -> (..., d*reps) along the lane (last) axis.

    Built from 2-operand lane concatenations (the standard rotary-embedding pattern),
    which Mosaic lowers with lane shifts only — avoids jnp.tile's broadcast+reshape path.
    """
    out = x
    built = 1
    while built * 2 <= reps:
        out = jnp.concatenate([out, out], axis=-1)
        built *= 2
    if built < reps:
        out = jnp.concatenate([out] + [x] * (reps - built), axis=-1)
    return out


def _attention_kernel(k_ref, v_ref, wd_ref, w1_ref, b1_ref, w2_ref, fold_ref,
                      b2_ref, o_ref):
    # k_ref   : (TB, D)        K tile
    # v_ref   : (TB, H*D)      V tile, lane-packed
    # wd_ref  : (1, D)         diag(W)
    # w1_ref  : (H*D, H*hid)   block-diag lin1.weight.T     (matmul dtype)
    # b1_ref  : (1, H*hid)     lin1.bias tiled over heads
    # w2_ref  : (H*hid, H*D)   group-broadcast lin2.weight  (matmul dtype)
    # fold_ref: (H*D, D)       0/1 sum-over-heads matrix    (matmul dtype)
    # b2_ref  : (1,) SMEM      lin2.bias (scalar)
    # o_ref   : (TB, D)
    v = v_ref[...]                                   # (TB, H*D) f32
    d = k_ref.shape[-1]
    reps = v.shape[-1] // d                          # = H
    mm_dtype = w1_ref.dtype

    # concat = V * diag(W) * K  (diag(W) folded into K before lane-tiling -> 32-wide mul)
    kw = k_ref[...] * wd_ref[...]                    # (TB, D)
    k_t = _lane_tile(kw, reps)                       # (TB, H*D)
    concat = v * k_t                                 # (TB, H*D)

    # lin1 + ReLU as one full-width MXU matmul against the block-diagonal weight.
    fc1 = jnp.dot(concat.astype(mm_dtype), w1_ref[...],
                  preferred_element_type=jnp.float32)
    fc1 = jnp.maximum(fc1 + b1_ref[...], 0.0)        # (TB, H*hid)

    # lin2 via the group-broadcast weight: every lane of head h holds score_h (exactly).
    score = jnp.dot(fc1.astype(mm_dtype), w2_ref[...],
                    preferred_element_type=jnp.float32) + b2_ref[0]      # (TB, H*D)

    # Softmax over the seq axis H: scores are replicated D times per head, so full-row
    # max is the head-max and full-row sum is D * (true denominator); fold the D into the
    # EUP reciprocal.
    m = jnp.max(score, axis=-1, keepdims=True)       # (TB, 1)
    e = jnp.exp(score - m)                           # (TB, H*D)
    denom = jnp.sum(e, axis=-1, keepdims=True)       # = D * softmax denominator
    alpha = e * (pl.reciprocal(denom, approx=True) * d)   # (TB, H*D), replicated per head

    # Dropout(0.5) is identity in eval mode.  Weighted sum over heads via the 0/1 fold
    # matrix (keeps the reduction on the MXU instead of segment XLU reductions).
    weighted = (alpha * v).astype(mm_dtype)          # (TB, H*D)
    o_ref[...] = jnp.dot(weighted, fold_ref[...],
                         preferred_element_type=jnp.float32).astype(o_ref.dtype)


@functools.partial(jax.jit, static_argnames=("block_b", "matmul_dtype"))
def attention_forward(K, V, w_diag, w1_t, b1, w2_row, b2, *, block_b=512,
                      matmul_dtype=jnp.float32):
    B, H, D = V.shape
    hid = w1_t.shape[1]
    HD, Hh = H * D, H * hid

    # ---- constant, structured weights (built once; a few hundred KB at most) ----
    eye_h = jnp.eye(H, dtype=jnp.float32)
    w1_bd = jnp.kron(eye_h, w1_t).astype(matmul_dtype)                         # (HD, Hh)
    w2_gb = jnp.kron(eye_h, jnp.outer(w2_row, jnp.ones((D,), jnp.float32))
                     ).astype(matmul_dtype)                                    # (Hh, HD)
    fold = jnp.tile(jnp.eye(D, dtype=jnp.float32), (H, 1)).astype(matmul_dtype)  # (HD, D)
    b1_t = jnp.tile(b1, H).reshape(1, Hh)
    wd = w_diag.reshape(1, D)
    b2 = jnp.asarray(b2, jnp.float32).reshape(1)

    v_packed = V.reshape(B, HD)                      # lane-dense V (free, contiguous)

    # ---- batch tiling: multiple of 8 sublanes, even grid length (v7x megacore) ----
    tb = _round_up(min(block_b, B), 8)
    n_steps = -(-B // tb)
    if n_steps % 2:
        n_steps = 2 if n_steps == 1 else n_steps + 1
        tb = _round_up(-(-B // n_steps), 8)
    b_pad = n_steps * tb
    if b_pad != B:
        # Zero padding is safe: padded rows give uniform alpha over zero V -> zero output.
        K = jnp.pad(K, ((0, b_pad - B), (0, 0)))
        v_packed = jnp.pad(v_packed, ((0, b_pad - B), (0, 0)))

    out = pl.pallas_call(
        _attention_kernel,
        out_shape=jax.ShapeDtypeStruct((b_pad, D), jnp.float32),
        grid=(n_steps,),
        in_specs=[
            pl.BlockSpec((tb, D), lambda b: (b, 0)),        # K
            pl.BlockSpec((tb, HD), lambda b: (b, 0)),       # V packed (lane-dense)
            pl.BlockSpec((1, D), lambda b: (0, 0)),         # diag(W)
            pl.BlockSpec((HD, Hh), lambda b: (0, 0)),       # block-diag lin1.weight.T
            pl.BlockSpec((1, Hh), lambda b: (0, 0)),        # lin1.bias tiled
            pl.BlockSpec((Hh, HD), lambda b: (0, 0)),       # group-broadcast lin2.weight
            pl.BlockSpec((HD, D), lambda b: (0, 0)),        # sum-over-heads fold
            pl.BlockSpec(memory_space=pltpu.MemorySpace.SMEM),  # lin2.bias scalar
        ],
        out_specs=pl.BlockSpec((tb, D), lambda b: (b, 0)),
        compiler_params=pltpu.CompilerParams(
            dimension_semantics=("parallel",)),
    )(K, v_packed, wd, w1_bd, b1_t, w2_gb, fold, b2)

    return out[:B]


def reference_forward(K, V, w_diag, w1_t, b1, w2_row, b2):
    concat = V * w_diag[None, None, :] * K[:, None, :]
    fc1 = jax.nn.relu(concat @ w1_t + b1)
    score = jnp.sum(fc1 * w2_row, axis=-1, keepdims=True) + b2
    alpha = jax.nn.softmax(score, axis=1)
    return jnp.sum(alpha * V, axis=1)


def xavier_normal(key, shape, fan_in, fan_out):
    std = float(np.sqrt(2.0 / (fan_in + fan_out)))
    return std * jax.random.normal(key, shape, dtype=jnp.float32)


if __name__ == "__main__":
    # Shapes implied by the module: seq H, feature dim D == input == hidden ('dd' einsum).
    # B is non-divisible by the batch tile to exercise padding + the even-grid logic.
    B, H, D = 260, 8, 32
    hid = D

    root = jax.random.PRNGKey(0)
    k_K, k_V, k_W, k_w1, k_b1, k_w2, k_b2 = jax.random.split(root, 7)

    K = jax.random.normal(k_K, (B, D), dtype=jnp.float32)
    V = jax.random.normal(k_V, (B, H, D), dtype=jnp.float32)

    W_param = xavier_normal(k_W, (D, hid), D, hid)       # nn.Parameter(input, hidden)
    w_diag = jnp.diagonal(W_param)                        # einsum 'dd' -> diagonal
    lin1_w = xavier_normal(k_w1, (hid, D), D, hid)        # Linear(input, hidden).weight
    lin1_b = 0.1 * jax.random.normal(k_b1, (hid,), dtype=jnp.float32)
    lin2_w = xavier_normal(k_w2, (1, hid), hid, 1)        # Linear(hidden, 1).weight
    lin2_b = 0.1 * jax.random.normal(k_b2, (1,), dtype=jnp.float32)

    w1_t = lin1_w.T                                       # (D, hid): kernel does x @ w1_t
    w2_row = lin2_w.reshape(hid)                          # (hid,)

    ref = reference_forward(K, V, w_diag, w1_t, lin1_b, w2_row, lin2_b)

    # f32 matmul operands: tight correctness check.
    out = attention_forward(K, V, w_diag, w1_t, lin1_b, w2_row, lin2_b)
    out = jax.block_until_ready(out)
    np.testing.assert_allclose(np.asarray(out), np.asarray(ref), rtol=5e-3, atol=5e-3)

    # bf16 MXU-operand path (v6e/v7x-native; f32 accumulation + f32 softmax/elementwise):
    # only matmul rounding differs, checked at a looser tolerance.
    out_bf16 = attention_forward(K, V, w_diag, w1_t, lin1_b, w2_row, lin2_b,
                                 matmul_dtype=jnp.bfloat16)
    out_bf16 = jax.block_until_ready(out_bf16)
    np.testing.assert_allclose(np.asarray(out_bf16), np.asarray(ref), rtol=5e-2, atol=5e-2)

    print("KERNEL_OK")
</pallas_src>

<mosaic_0001>
module attributes {stable_mosaic.version = 11 : i64} {
  func.func @_attention_kernel(%arg0: i32, %arg1: memref<136x32xf32, #tpu.memory_space<vmem>>, %arg2: memref<136x256xf32, #tpu.memory_space<vmem>>, %arg3: memref<1x32xf32, #tpu.memory_space<vmem>>, %arg4: memref<256x256xf32, #tpu.memory_space<vmem>>, %arg5: memref<1x256xf32, #tpu.memory_space<vmem>>, %arg6: memref<256x256xf32, #tpu.memory_space<vmem>>, %arg7: memref<256x32xf32, #tpu.memory_space<vmem>>, %arg8: memref<1xf32, #tpu.memory_space<smem>>, %arg9: memref<136x32xf32, #tpu.memory_space<vmem>>) attributes {dimension_semantics = [#tpu.dimension_semantics<parallel>], iteration_bounds = array<i64: 2>, scalar_prefetch = 0 : i64, scratch_operands = 0 : i64, tpu.core_type = #tpu.core_type<tc>, window_params = [{transform_indices = @transform_0, window_bounds = array<i64: 136, 32>}, {transform_indices = @transform_1, window_bounds = array<i64: 136, 256>}, {pipeline_mode = #tpu.pipeline_mode<synchronous>, transform_indices = @transform_2, window_bounds = array<i64: 1, 32>}, {pipeline_mode = #tpu.pipeline_mode<synchronous>, transform_indices = @transform_3, window_bounds = array<i64: 256, 256>}, {pipeline_mode = #tpu.pipeline_mode<synchronous>, transform_indices = @transform_4, window_bounds = array<i64: 1, 256>}, {pipeline_mode = #tpu.pipeline_mode<synchronous>, transform_indices = @transform_5, window_bounds = array<i64: 256, 256>}, {pipeline_mode = #tpu.pipeline_mode<synchronous>, transform_indices = @transform_6, window_bounds = array<i64: 256, 32>}, {transform_indices = @transform_7, window_bounds = array<i64: 1>}, {transform_indices = @transform_8, window_bounds = array<i64: 136, 32>}]} {
    %c0 = arith.constant 0 : index
    %c0_0 = arith.constant 0 : index
    %0 = vector.load %arg2[%c0, %c0_0] : memref<136x256xf32, #tpu.memory_space<vmem>>, vector<136x256xf32>
    %c0_1 = arith.constant 0 : index
    %c0_2 = arith.constant 0 : index
    %1 = vector.load %arg1[%c0_1, %c0_2] : memref<136x32xf32, #tpu.memory_space<vmem>>, vector<136x32xf32>
    %c0_3 = arith.constant 0 : index
    %c0_4 = arith.constant 0 : index
    %2 = vector.load %arg3[%c0_3, %c0_4] : memref<1x32xf32, #tpu.memory_space<vmem>>, vector<1x32xf32>
    %3 = vector.broadcast %2 : vector<1x32xf32> to vector<136x32xf32>
    %4 = arith.mulf %1, %3 : vector<136x32xf32>
    %5 = tpu.concatenate %4, %4 in 1 : vector<136x32xf32>, vector<136x32xf32> -> vector<136x64xf32>
    %6 = tpu.concatenate %5, %5 in 1 : vector<136x64xf32>, vector<136x64xf32> -> vector<136x128xf32>
    %7 = tpu.concatenate %6, %6 in 1 : vector<136x128xf32>, vector<136x128xf32> -> vector<136x256xf32>
    %8 = arith.mulf %0, %7 : vector<136x256xf32>
    %c0_5 = arith.constant 0 : index
    %c0_6 = arith.constant 0 : index
    %9 = vector.load %arg4[%c0_5, %c0_6] : memref<256x256xf32, #tpu.memory_space<vmem>>, vector<256x256xf32>
    %cst = arith.constant dense<0.000000e+00> : vector<136x256xf32>
    %10 = tpu.matmul %8, %9, %cst {dimension_numbers = #tpu.dot_dimension_numbers<[1], [0], [0], [1], [0, 0, 1, 1], [], []>} : vector<136x256xf32>, vector<256x256xf32>, vector<136x256xf32> -> vector<136x256xf32>
    %c0_7 = arith.constant 0 : index
    %c0_8 = arith.constant 0 : index
    %11 = vector.load %arg5[%c0_7, %c0_8] : memref<1x256xf32, #tpu.memory_space<vmem>>, vector<1x256xf32>
    %12 = vector.broadcast %11 : vector<1x256xf32> to vector<136x256xf32>
    %13 = arith.addf %10, %12 : vector<136x256xf32>
    %cst_9 = arith.constant 0.000000e+00 : f32
    %14 = vector.broadcast %cst_9 : f32 to vector<136x256xf32>
    %15 = arith.maximumf %13, %14 : vector<136x256xf32>
    %c0_10 = arith.constant 0 : index
    %c0_11 = arith.constant 0 : index
    %16 = vector.load %arg6[%c0_10, %c0_11] : memref<256x256xf32, #tpu.memory_space<vmem>>, vector<256x256xf32>
    %cst_12 = arith.constant dense<0.000000e+00> : vector<136x256xf32>
    %17 = tpu.matmul %15, %16, %cst_12 {dimension_numbers = #tpu.dot_dimension_numbers<[1], [0], [0], [1], [0, 0, 1, 1], [], []>} : vector<136x256xf32>, vector<256x256xf32>, vector<136x256xf32> -> vector<136x256xf32>
    %c0_13 = arith.constant 0 : index
    %18 = memref.load %arg8[%c0_13] : memref<1xf32, #tpu.memory_space<smem>>
    %19 = vector.broadcast %18 : f32 to vector<136x256xf32>
    %20 = arith.addf %17, %19 : vector<136x256xf32>
    %cst_14 = arith.constant dense<0xFF800000> : vector<136xf32>
    %21 = vector.multi_reduction <maximumf>, %20, %cst_14 [1] : vector<136x256xf32> to vector<136xf32>
    %22 = vector.shape_cast %21 : vector<136xf32> to vector<136x1xf32>
    %23 = vector.broadcast %22 : vector<136x1xf32> to vector<136x256xf32>
    %24 = arith.subf %20, %23 : vector<136x256xf32>
    %25 = math.exp %24 : vector<136x256xf32>
    %cst_15 = arith.constant dense<0.000000e+00> : vector<136xf32>
    %26 = vector.multi_reduction <add>, %25, %cst_15 [1] : vector<136x256xf32> to vector<136xf32>
    %27 = vector.shape_cast %26 : vector<136xf32> to vector<136x1xf32>
    %28 = tpu.reciprocal %27 {approx = true} : vector<136x1xf32> -> vector<136x1xf32>
    %cst_16 = arith.constant 3.200000e+01 : f32
    %29 = vector.broadcast %cst_16 : f32 to vector<136x1xf32>
    %30 = arith.mulf %28, %29 : vector<136x1xf32>
    %31 = vector.broadcast %30 : vector<136x1xf32> to vector<136x256xf32>
    %32 = arith.mulf %25, %31 : vector<136x256xf32>
    %33 = arith.mulf %32, %0 : vector<136x256xf32>
    %c0_17 = arith.constant 0 : index
    %c0_18 = arith.constant 0 : index
    %34 = vector.load %arg7[%c0_17, %c0_18] : memref<256x32xf32, #tpu.memory_space<vmem>>, vector<256x32xf32>
    %cst_19 = arith.constant dense<0.000000e+00> : vector<136x32xf32>
    %35 = tpu.matmul %33, %34, %cst_19 {dimension_numbers = #tpu.dot_dimension_numbers<[1], [0], [0], [1], [0, 0, 1, 1], [], []>} : vector<136x256xf32>, vector<256x32xf32>, vector<136x32xf32> -> vector<136x32xf32>
    %c0_20 = arith.constant 0 : index
    %c0_21 = arith.constant 0 : index
    %36 = vector.load %arg9[%c0_20, %c0_21] : memref<136x32xf32, #tpu.memory_space<vmem>>, vector<136x32xf32>
    tpu.vector_store %arg9[%c0_20, %c0_21], %35 {strides = array<i32>} : memref<136x32xf32, #tpu.memory_space<vmem>>, vector<136x32xf32>,
    return
  }
  func.func @transform_0(%arg0: i32) -> (i32, i32) {
    %c0_i32 = arith.constant 0 : i32
    %c0_i32_0 = arith.constant 0 : i32
    return %arg0, %c0_i32 : i32, i32
  }
  func.func @transform_1(%arg0: i32) -> (i32, i32) {
    %c0_i32 = arith.constant 0 : i32
    %c0_i32_0 = arith.constant 0 : i32
    return %arg0, %c0_i32 : i32, i32
  }
  func.func @transform_2(%arg0: i32) -> (i32, i32) {
    %c0_i32 = arith.constant 0 : i32
    %c0_i32_0 = arith.constant 0 : i32
    %c0_i32_1 = arith.constant 0 : i32
    return %c0_i32, %c0_i32_0 : i32, i32
  }
  func.func @transform_3(%arg0: i32) -> (i32, i32) {
    %c0_i32 = arith.constant 0 : i32
    %c0_i32_0 = arith.constant 0 : i32
    %c0_i32_1 = arith.constant 0 : i32
    return %c0_i32, %c0_i32_0 : i32, i32
  }
  func.func @transform_4(%arg0: i32) -> (i32, i32) {
    %c0_i32 = arith.constant 0 : i32
    %c0_i32_0 = arith.constant 0 : i32
    %c0_i32_1 = arith.constant 0 : i32
    return %c0_i32, %c0_i32_0 : i32, i32
  }
  func.func @transform_5(%arg0: i32) -> (i32, i32) {
    %c0_i32 = arith.constant 0 : i32
    %c0_i32_0 = arith.constant 0 : i32
    %c0_i32_1 = arith.constant 0 : i32
    return %c0_i32, %c0_i32_0 : i32, i32
  }
  func.func @transform_6(%arg0: i32) -> (i32, i32) {
    %c0_i32 = arith.constant 0 : i32
    %c0_i32_0 = arith.constant 0 : i32
    %c0_i32_1 = arith.constant 0 : i32
    return %c0_i32, %c0_i32_0 : i32, i32
  }
  func.func @transform_7(%arg0: i32) -> i32 {
    %c0_i32 = arith.constant 0 : i32
    %c0_i32_0 = arith.constant 0 : i32
    return %c0_i32 : i32
  }
  func.func @transform_8(%arg0: i32) -> (i32, i32) {
    %c0_i32 = arith.constant 0 : i32
    %c0_i32_0 = arith.constant 0 : i32
    return %arg0, %c0_i32 : i32, i32
  }
}

</mosaic_0001>

<bundles_post_ra>
// kernel: tile.19
= control target key start
LH: loop header
LB: loop body
LE: loop exit
PB: predicated region body
PF: predicated region fallthrough
CT: control target
= control target key end

     0   :  { %s7_s6 = smov 3  ;;  %s14_s9 = smov 3  ;;  %vm4_vm0 = vcmask 261120   ;;  %vm11_vm1 = vcmask 1048320   ;;  %vm18_vm2 = vcmask 785920   ;;  %vm25_vm3 = vcmask 523520   ;;  %s79_s0 = inlined_call_operand.vmem [shape: f32[8,32], index: 0, kind: input, shape index: {}]   ;;  %s80_s1 = inlined_call_operand.vmem [shape: f32[1,256], index: 1, kind: output, shape index: {}]  }
   0x1   :  { %v41_v0 = vld [vmem:[%s79_s0 + $0x3] ss:$4 sm:%s7_s6]   ;;  %s48_s10 = smov 96   ;;  %s21_s11 = smov 3  ;;  %v42_v1 = vld [vmem:[%s79_s0 + $0x2] ss:$4 sm:%s14_s9]  }
   0x2   :  { %9 = vrot.lane.b32.xlu0 %v41_v0, %s48_s10  ;;  %v43_v2 = vld [vmem:[%s79_s0 + $0x1] ss:$4 sm:%s21_s11]   ;;  %s2_s16 = smov 3  ;;  %s49_s17 = smov 32  }
   0x3   :  { %23 = vrot.lane.b32.xlu1 %v43_v2, %s49_s17  ;;  %v3_v3 = vld [vmem:[%s79_s0] ss:$4 sm:%s2_s16]   ;;  %s50_s0 = smov 64  }
   0x4   :  { %5 = vst.msk [vmem:[#allocation0] ss:$8 sm:$0x3] %vm4_vm0, %v3_v3  }
   0x6   :  { %16 = vrot.lane.b32.xlu0 %v42_v1, %s50_s0 }
  0x74   :  { %v10_v4 = vpop.permute.xlu0 %9  }
  0x75   :  { %12 = vst.msk [vmem:[#allocation0] ss:$8 sm:$0x3] %vm11_vm1, %v10_v4   ;;  %v24_v5 = vpop.permute.xlu1 %23  }
  0x78   :  { %v17_v6 = vpop.permute.xlu0 %16  }
  0x79   :  { %19 = vst.msk [vmem:[#allocation0] ss:$8 sm:$0x3] %vm18_vm2, %v17_v6  }
  0x7a   :  { %26 = vst.msk [vmem:[#allocation0] ss:$8 sm:$0x3] %vm25_vm3, %v24_v5  }
  0x81   :  { %v31_v7 = vld [vmem:[#allocation0] sm:$0x1]  ;;  %v36_v8 = vld [vmem:[#allocation0 + $0x8] sm:$0x1] }
  0x82   :  { %34 = vst [vmem:[%s80_s1] sm:$0x1] %v31_v7  ;;  %44 = vst [vmem:[%s80_s1 + $0x1] sm:$0x1] %v36_v8 }

// kernel: attention_forward.1
= control target key start
LH: loop header
LB: loop body
LE: loop exit
PB: predicated region body
PF: predicated region fallthrough
CT: control target
= control target key end

     0   :  { %s1982_s29 = smov 0   ;;  %s3260_s0 = inlined_call_operand.vmem [shape: f32[272,32], index: 0, kind: input, shape index: {}]   ;;  %s3261_s1 = inlined_call_operand.vmem [shape: f32[272,256], index: 1, kind: input, shape index: {}]   ;;  %s3262_s2 = inlined_call_operand.vmem [shape: f32[1,32], index: 2, kind: input, shape index: {}]   ;;  %s3263_s3 = inlined_call_operand.vmem [shape: f32[256,256], index: 3, kind: input, shape index: {}]   ;;  %s3264_s4 = inlined_call_operand.vmem [shape: f32[1,256], index: 4, kind: input, shape index: {}]   ;;  %s3265_s5 = inlined_call_operand.vmem [shape: f32[256,256], index: 5, kind: input, shape index: {}]   ;;  %s3266_s6 = inlined_call_operand.vmem [shape: f32[256,32], index: 6, kind: input, shape index: {}]   ;;  %s3267_s7 = inlined_call_operand.<no memory space> [shape: f32[1], index: 7, kind: input, shape index: {}]   ;;  %s3268_s8 = inlined_call_operand.vmem [shape: f32[272,32], index: 8, kind: output, shape index: {}]  }
   0x1   :  { %13 = sst [smem:[#allocation2]] %s3267_s7 }
   0x2 LB: > { %s1699_s30 = sadd.s32 4294967295, %s1929_s29   ;;  %p1703_p0 = scmp.ge.s32.totalorder %s1929_s29, 1  ;;  %s1929_s29 = sphi %s1982_s29, %s19_s29  }
   0x3   : > { %p276_p1 = scmp.lt.s32.totalorder %s1929_s29, 3 }
   0x5   : > { %p277_p2 = pnand %p1703_p0, %p276_p1 }
   0x6   : > { %s316_s9 = smul.u32 (!%p277_p2), 17, %s1699_s30  ;;  %s1931_s15 = smov (!%p277_p2), 32  }
   0x7   : > { %280 = sbr.rel (%p277_p2) target bundleno = 1231 (0x4cf), region = 52  ;;  %s1932_s25 = smov (!%p277_p2), 64  }
   0x8   : > { %p317_p3 = scmp.lt.s32.totalorder (!%p277_p2), %s316_s9, 33  ;;  %s957_s20 = sld [smem:[#allocation2]] (!%p277_p2) }
   0xc   : > { %s3270_s9 = smov (!%p317_p3, %s316_s9), 33  ;;  %v1996_v0 = vld [vmem:[%s3262_s2] ss:$0 sm:$0xff]  ;;  %v647_v31 = vld [vmem:[%s3263_s3 + $0xf8] sm:$0xff]  ;;  %v646_v32 = vld [vmem:[%s3263_s3 + $0xf0] sm:$0xff]  ;;  %vm478_vm0 = vcmask 261120  }
   0xd   : > { %s1704_s7 = sshll.u32 %s3270_s9, 3  ;;  %692 = vmatprep.subr.mxu0 %v647_v31  ;;  %v645_v34 = vld [vmem:[%s3263_s3 + $0xe8] sm:$0xff]  ;;  %v644_v35 = vld [vmem:[%s3263_s3 + $0xe0] sm:$0xff]  ;;  %v643_v36 = vld [vmem:[%s3263_s3 + $0xd8] sm:$0xff]  ;;  %s1711_s13 = sshll.u32 %s3270_s9, 4  ;;  %vm564_vm1 = vcmask 523264  }
   0xe   : > { %s2003_s14 = scalar_lea.vmem %s3260_s0, %s1704_s7  ;;  %693 = vmatpush1.msra.mxu0 %v646_v32  ;;  %v642_v37 = vld [vmem:[%s3263_s3 + $0xd0] sm:$0xff]  ;;  %v641_v39 = vld [vmem:[%s3263_s3 + $0xc8] sm:$0xff]  ;;  %v640_v41 = vld [vmem:[%s3263_s3 + $0xc0] sm:$0xff]  ;;  %s2573_s21 = scalar_lea.vmem %s3261_s1, %s1711_s13 }
   0xf   : > { %v371_v1 = vld [vmem:[%s2003_s14 + $0x10] sm:$0xff]  ;;  %v369_v2 = vld [vmem:[%s2003_s14] sm:$0xff]  ;;  %v372_v3 = vld [vmem:[%s2003_s14 + $0x18] sm:$0xff]  ;;  %694 = vmatprep.subr.mxu0 %v645_v34  ;;  %s3221_s11 = scalar_lea.vmem %s3268_s8, %s1704_s7 }
  0x10   : > { %v2009_v4 = vmul.f32 %v1996_v0, %v371_v1  ;;  %v2012_v5 = vmul.f32 %v1996_v0, %v369_v2  ;;  %v370_v6 = vld [vmem:[%s2003_s14 + $0x8] sm:$0xff]  ;;  %v2020_v7 = vmul.f32 %v1996_v0, %v372_v3  ;;  %v373_v10 = vld [vmem:[%s2003_s14 + $0x20] sm:$0xff]  ;;  %v376_v13 = vld [vmem:[%s2003_s14 + $0x38] sm:$0xff]  ;;  %695 = vmatpush1.msra.mxu0 %v644_v35 }
  0x11   : > { %v2023_v8 = vmul.f32 %v1996_v0, %v370_v6  ;;  %v374_v9 = vld [vmem:[%s2003_s14 + $0x28] sm:$0xff]  ;;  %v2035_v12 = vmul.f32 %v1996_v0, %v373_v10  ;;  %v375_v14 = vld [vmem:[%s2003_s14 + $0x30] sm:$0xff]  ;;  %v2044_v15 = vmul.f32 %v1996_v0, %v376_v13  ;;  %v377_v18 = vld [vmem:[%s2003_s14 + $0x40] sm:$0xff]  ;;  %696 = vmatprep.subr.mxu0 %v643_v36 }
  0x12   : > { %431 = vrot.lane.b32.xlu1 %v2009_v4, %s1931_s15  ;;  %427 = vrot.lane.b32.xlu0 %v2012_v5, %s1931_s15  ;;  %v2032_v11 = vmul.f32 %v1996_v0, %v374_v9  ;;  %v2047_v16 = vmul.f32 %v1996_v0, %v375_v14  ;;  %v378_v17 = vld [vmem:[%s2003_s14 + $0x48] sm:$0xff]  ;;  %v2059_v20 = vmul.f32 %v1996_v0, %v377_v18  ;;  %v380_v21 = vld [vmem:[%s2003_s14 + $0x58] sm:$0xff] }
  0x13   : > { %v2056_v19 = vmul.f32 %v1996_v0, %v378_v17  ;;  %v379_v22 = vld [vmem:[%s2003_s14 + $0x50] sm:$0xff]  ;;  %v2068_v23 = vmul.f32 %v1996_v0, %v380_v21  ;;  %v382_v25 = vld [vmem:[%s2003_s14 + $0x68] sm:$0xff]  ;;  %v381_v26 = vld [vmem:[%s2003_s14 + $0x60] sm:$0xff]  ;;  %697 = vmatpush1.msra.mxu0 %v642_v37 }
  0x14   : > { %v2071_v24 = vmul.f32 %v1996_v0, %v379_v22  ;;  %v2080_v27 = vmul.f32 %v1996_v0, %v382_v25  ;;  %v2083_v28 = vmul.f32 %v1996_v0, %v381_v26  ;;  %v383_v29 = vld [vmem:[%s2003_s14 + $0x70] sm:$0xff]  ;;  %v384_v33 = vld [vmem:[%s2003_s14 + $0x78] sm:$0xff]  ;;  %v385_v40 = vld [vmem:[%s2003_s14 + $0x80] sm:$0xff]  ;;  %698 = vmatprep.subr.mxu0 %v641_v39 }
  0x15   : > { %v2091_v30 = vmul.f32 %v1996_v0, %v383_v29  ;;  %v2115_v38 = vmul.f32 %v1996_v0, %v384_v33  ;;  %v639_v42 = vld [vmem:[%s3263_s3 + $0xb8] sm:$0xff]  ;;  %v638_v43 = vld [vmem:[%s3263_s3 + $0xb0] sm:$0xff]  ;;  %v2133_v44 = vmul.f32 %v1996_v0, %v385_v40  ;;  %699 = vmatpush1.msra.mxu0 %v640_v41  ;;  %v637_v45 = vld [vmem:[%s3263_s3 + $0xa8] sm:$0xff] }
  0x16   : > { %433 = vrot.lane.b32.xlu1 %v2020_v7, %s1931_s15  ;;  %429 = vrot.lane.b32.xlu0 %v2023_v8, %s1931_s15  ;;  %v636_v46 = vld [vmem:[%s3263_s3 + $0xa0] sm:$0xff]  ;;  %v635_v47 = vld [vmem:[%s3263_s3 + $0x98] sm:$0xff] }
  0x17   : > { %700 = vmatprep.subr.mxu0 %v639_v42  ;;  %v634_v48 = vld [vmem:[%s3263_s3 + $0x90] sm:$0xff]  ;;  %v633_v49 = vld [vmem:[%s3263_s3 + $0x88] sm:$0xff]  ;;  %v632_v50 = vld [vmem:[%s3263_s3 + $0x80] sm:$0xff] }
  0x18   : > { %701 = vmatpush1.msra.mxu0 %v638_v43  ;;  %v631_v51 = vld [vmem:[%s3263_s3 + $0x78] sm:$0xff]  ;;  %v630_v52 = vld [vmem:[%s3263_s3 + $0x70] sm:$0xff]  ;;  %v629_v53 = vld [vmem:[%s3263_s3 + $0x68] sm:$0xff] }
  0x19   : > { %702 = vmatprep.subr.mxu0 %v637_v45  ;;  %v628_v54 = vld [vmem:[%s3263_s3 + $0x60] sm:$0xff]  ;;  %v627_v55 = vld [vmem:[%s3263_s3 + $0x58] sm:$0xff]  ;;  %v626_v56 = vld [vmem:[%s3263_s3 + $0x50] sm:$0xff] }
  0x1a   : > { %437 = vrot.lane.b32.xlu1 %v2032_v11, %s1931_s15  ;;  %435 = vrot.lane.b32.xlu0 %v2035_v12, %s1931_s15  ;;  %v625_v57 = vld [vmem:[%s3263_s3 + $0x48] sm:$0xff]  ;;  %v624_v58 = vld [vmem:[%s3263_s3 + $0x40] sm:$0xff] }
  0x1b   : > { %703 = vmatpush1.msra.mxu0 %v636_v46  ;;  %v623_v59 = vld [vmem:[%s3263_s3 + $0x38] sm:$0xff]  ;;  %v622_v60 = vld [vmem:[%s3263_s3 + $0x30] sm:$0xff]  ;;  %v621_v61 = vld [vmem:[%s3263_s3 + $0x28] sm:$0xff] }
  0x1c   : > { %704 = vmatprep.subr.mxu0 %v635_v47  ;;  %v620_v62 = vld [vmem:[%s3263_s3 + $0x20] sm:$0xff]  ;;  %v619_v63 = vld [vmem:[%s3263_s3 + $0x18] sm:$0xff]  ;;  %v618_v0 = vld [vmem:[%s3263_s3 + $0x10] sm:$0xff] }
  0x1d   : > { %705 = vmatpush1.msra.mxu0 %v634_v48  ;;  %v617_v1 = vld [vmem:[%s3263_s3 + $0x8] sm:$0xff]  ;;  %v616_v2 = vld [vmem:[%s3263_s3] sm:$0xff]  ;;  %v679_v3 = vld [vmem:[%s3263_s3 + $0x1f8] sm:$0xff] }
  0x1e   : > { %441 = vrot.lane.b32.xlu1 %v2044_v15, %s1931_s15  ;;  %439 = vrot.lane.b32.xlu0 %v2047_v16, %s1931_s15  ;;  %v678_v6 = vld [vmem:[%s3263_s3 + $0x1f0] sm:$0xff]  ;;  %v677_v9 = vld [vmem:[%s3263_s3 + $0x1e8] sm:$0xff] }
  0x1f   : > { %706 = vmatprep.subr.mxu0 %v633_v49  ;;  %v676_v10 = vld [vmem:[%s3263_s3 + $0x1e0] sm:$0xff]  ;;  %v675_v13 = vld [vmem:[%s3263_s3 + $0x1d8] sm:$0xff]  ;;  %v674_v14 = vld [vmem:[%s3263_s3 + $0x1d0] sm:$0xff] }
  0x20   : > { %707 = vmatpush1.msra.mxu0 %v632_v50  ;;  %v673_v17 = vld [vmem:[%s3263_s3 + $0x1c8] sm:$0xff]  ;;  %v672_v18 = vld [vmem:[%s3263_s3 + $0x1c0] sm:$0xff]  ;;  %v671_v21 = vld [vmem:[%s3263_s3 + $0x1b8] sm:$0xff] }
  0x21   : > { %708 = vmatprep.subr.mxu0 %v631_v51  ;;  %v670_v22 = vld [vmem:[%s3263_s3 + $0x1b0] sm:$0xff]  ;;  %v669_v25 = vld [vmem:[%s3263_s3 + $0x1a8] sm:$0xff]  ;;  %v668_v26 = vld [vmem:[%s3263_s3 + $0x1a0] sm:$0xff] }
  0x22   : > { %445 = vrot.lane.b32.xlu1 %v2056_v19, %s1931_s15  ;;  %443 = vrot.lane.b32.xlu0 %v2059_v20, %s1931_s15  ;;  %v667_v29 = vld [vmem:[%s3263_s3 + $0x198] sm:$0xff]  ;;  %v666_v31 = vld [vmem:[%s3263_s3 + $0x190] sm:$0xff] }
  0x23   : > { %709 = vmatpush1.msra.mxu0 %v630_v52  ;;  %v665_v32 = vld [vmem:[%s3263_s3 + $0x188] sm:$0xff]  ;;  %v664_v33 = vld [vmem:[%s3263_s3 + $0x180] sm:$0xff]  ;;  %v663_v34 = vld [vmem:[%s3263_s3 + $0x178] sm:$0xff] }
  0x24   : > { %710 = vmatprep.subr.mxu0 %v629_v53  ;;  %v662_v35 = vld [vmem:[%s3263_s3 + $0x170] sm:$0xff]  ;;  %v661_v36 = vld [vmem:[%s3263_s3 + $0x168] sm:$0xff]  ;;  %v660_v37 = vld [vmem:[%s3263_s3 + $0x160] sm:$0xff] }
  0x25   : > { %711 = vmatpush1.msra.mxu0 %v628_v54  ;;  %v659_v39 = vld [vmem:[%s3263_s3 + $0x158] sm:$0xff]  ;;  %v658_v40 = vld [vmem:[%s3263_s3 + $0x150] sm:$0xff]  ;;  %v657_v41 = vld [vmem:[%s3263_s3 + $0x148] sm:$0xff] }
  0x26   : > { %449 = vrot.lane.b32.xlu1 %v2068_v23, %s1931_s15  ;;  %447 = vrot.lane.b32.xlu0 %v2071_v24, %s1931_s15  ;;  %v656_v42 = vld [vmem:[%s3263_s3 + $0x140] sm:$0xff]  ;;  %v655_v43 = vld [vmem:[%s3263_s3 + $0x138] sm:$0xff] }
  0x27   : > { %712 = vmatprep.subr.mxu0 %v627_v55  ;;  %v654_v45 = vld [vmem:[%s3263_s3 + $0x130] sm:$0xff]  ;;  %v653_v46 = vld [vmem:[%s3263_s3 + $0x128] sm:$0xff]  ;;  %v652_v47 = vld [vmem:[%s3263_s3 + $0x120] sm:$0xff] }
  0x28   : > { %713 = vmatpush1.msra.mxu0 %v626_v56  ;;  %v651_v48 = vld [vmem:[%s3263_s3 + $0x118] sm:$0xff]  ;;  %v650_v49 = vld [vmem:[%s3263_s3 + $0x110] sm:$0xff]  ;;  %v649_v50 = vld [vmem:[%s3263_s3 + $0x108] sm:$0xff] }
  0x29   : > { %714 = vmatprep.subr.mxu0 %v625_v57  ;;  %v648_v51 = vld [vmem:[%s3263_s3 + $0x100] sm:$0xff] }
  0x2a   : > { %453 = vrot.lane.b32.xlu1 %v2080_v27, %s1931_s15  ;;  %451 = vrot.lane.b32.xlu0 %v2083_v28, %s1931_s15 }
  0x2b   : > { %715 = vmatpush1.msra.mxu0 %v624_v58 }
  0x2c   : > { %716 = vmatprep.subr.mxu0 %v623_v59 }
  0x2d   : > { %717 = vmatpush1.msra.mxu0 %v622_v60 }
  0x2e   : > { %455 = vrot.lane.b32.xlu0 %v2091_v30, %s1931_s15  ;;  %718 = vmatprep.subr.mxu0 %v621_v61 }
  0x2f   : > { %719 = vmatpush1.msra.mxu0 %v620_v62 }
  0x30   : > { %720 = vmatprep.subr.mxu0 %v619_v63 }
  0x31   : > { %721 = vmatpush1.msra.mxu0 %v618_v0 }
  0x32   : > { %457 = vrot.lane.b32.xlu0 %v2115_v38, %s1931_s15  ;;  %722 = vmatprep.subr.mxu0 %v617_v1 }
  0x33   : > { %723 = vmatpush1.msra.mxu0 %v616_v2 }
  0x34   : > { %724 = vmatprep.subr.mxu0 %v679_v3 }
  0x35   : > { %725 = vmatpush2.msra.mxu0 %v678_v6 }
  0x36   : > { %459 = vrot.lane.b32.xlu0 %v2133_v44, %s1931_s15  ;;  %726 = vmatprep.subr.mxu0 %v677_v9 }
  0x37   : > { %727 = vmatpush2.msra.mxu0 %v676_v10 }
  0x38   : > { %728 = vmatprep.subr.mxu0 %v675_v13 }
  0x39   : > { %729 = vmatpush2.msra.mxu0 %v674_v14  ;;  %v922_v14 = vld [vmem:[%s3265_s5 + $0xe8] sm:$0xff] }
  0x3a   : > { %730 = vmatprep.subr.mxu0 %v673_v17  ;;  %v920_v17 = vld [vmem:[%s3265_s5 + $0xd8] sm:$0xff] }
  0x3b   : > { %731 = vmatpush2.msra.mxu0 %v672_v18  ;;  %v919_v18 = vld [vmem:[%s3265_s5 + $0xd0] sm:$0xff] }
  0x3c   : > { %732 = vmatprep.subr.mxu0 %v671_v21  ;;  %v918_v21 = vld [vmem:[%s3265_s5 + $0xc8] sm:$0xff] }
  0x3d   : > { %733 = vmatpush2.msra.mxu0 %v670_v22  ;;  %v917_v22 = vld [vmem:[%s3265_s5 + $0xc0] sm:$0xff] }
  0x3e   : > { %734 = vmatprep.subr.mxu0 %v669_v25  ;;  %v916_v25 = vld [vmem:[%s3265_s5 + $0xb8] sm:$0xff] }
  0x3f   : > { %735 = vmatpush2.msra.mxu0 %v668_v26  ;;  %v915_v26 = vld [vmem:[%s3265_s5 + $0xb0] sm:$0xff] }
  0x40   : > { %736 = vmatprep.subr.mxu0 %v667_v29  ;;  %v914_v29 = vld [vmem:[%s3265_s5 + $0xa8] sm:$0xff] }
  0x41   : > { %737 = vmatpush2.msra.mxu0 %v666_v31  ;;  %v913_v31 = vld [vmem:[%s3265_s5 + $0xa0] sm:$0xff] }
  0x42   : > { %738 = vmatprep.subr.mxu0 %v665_v32  ;;  %v912_v32 = vld [vmem:[%s3265_s5 + $0x98] sm:$0xff] }
  0x43   : > { %739 = vmatpush2.msra.mxu0 %v664_v33  ;;  %v911_v33 = vld [vmem:[%s3265_s5 + $0x90] sm:$0xff] }
  0x44   : > { %740 = vmatprep.subr.mxu0 %v663_v34  ;;  %v910_v34 = vld [vmem:[%s3265_s5 + $0x88] sm:$0xff] }
  0x45   : > { %741 = vmatpush2.msra.mxu0 %v662_v35  ;;  %v909_v35 = vld [vmem:[%s3265_s5 + $0x80] sm:$0xff] }
  0x46   : > { %742 = vmatprep.subr.mxu0 %v661_v36  ;;  %v908_v36 = vld [vmem:[%s3265_s5 + $0x78] sm:$0xff] }
  0x47   : > { %743 = vmatpush2.msra.mxu0 %v660_v37  ;;  %v907_v37 = vld [vmem:[%s3265_s5 + $0x70] sm:$0xff] }
  0x48   : > { %744 = vmatprep.subr.mxu0 %v659_v39  ;;  %v906_v39 = vld [vmem:[%s3265_s5 + $0x68] sm:$0xff] }
  0x49   : > { %745 = vmatpush2.msra.mxu0 %v658_v40  ;;  %v905_v40 = vld [vmem:[%s3265_s5 + $0x60] sm:$0xff] }
  0x4a   : > { %746 = vmatprep.subr.mxu0 %v657_v41  ;;  %v904_v41 = vld [vmem:[%s3265_s5 + $0x58] sm:$0xff] }
  0x4b   : > { %747 = vmatpush2.msra.mxu0 %v656_v42  ;;  %v903_v42 = vld [vmem:[%s3265_s5 + $0x50] sm:$0xff] }
  0x4c   : > { %748 = vmatprep.subr.mxu0 %v655_v43  ;;  %v902_v43 = vld [vmem:[%s3265_s5 + $0x48] sm:$0xff] }
  0x4d   : > { %749 = vmatpush2.msra.mxu0 %v654_v45  ;;  %v901_v45 = vld [vmem:[%s3265_s5 + $0x40] sm:$0xff] }
  0x4e   : > { %750 = vmatprep.subr.mxu0 %v653_v46  ;;  %v900_v46 = vld [vmem:[%s3265_s5 + $0x38] sm:$0xff] }
  0x4f   : > { %751 = vmatpush2.msra.mxu0 %v652_v47  ;;  %v899_v47 = vld [vmem:[%s3265_s5 + $0x30] sm:$0xff] }
  0x50   : > { %752 = vmatprep.subr.mxu0 %v651_v48  ;;  %v898_v48 = vld [vmem:[%s3265_s5 + $0x28] sm:$0xff] }
  0x51   : > { %753 = vmatpush2.msra.mxu0 %v650_v49  ;;  %v897_v49 = vld [vmem:[%s3265_s5 + $0x20] sm:$0xff] }
  0x52   : > { %754 = vmatprep.subr.mxu0 %v649_v50  ;;  %v896_v50 = vld [vmem:[%s3265_s5 + $0x18] sm:$0xff] }
  0x53   : > { %755 = vmatpush2.msra.mxu0 %v648_v51  ;;  %v895_v51 = vld [vmem:[%s3265_s5 + $0x10] sm:$0xff] }
  0x84   : > { %v432_v52 = vpop.permute.xlu1 %431  ;;  %v428_v53 = vpop.permute.xlu0 %427 }
  0x85   : > { %v2301_v54 = vsel %vm478_vm0, %v2012_v5, %v428_v53  ;;  %v2319_v5 = vsel %vm478_vm0, %v2009_v4, %v432_v52  ;;  %v894_v52 = vld [vmem:[%s3265_s5 + $0x8] sm:$0xff]  ;;  %v893_v53 = vld [vmem:[%s3265_s5] sm:$0xff] }
  0x86   : > { %513 = vrot.lane.b32.xlu1 %v2301_v54, %s1932_s25 }
  0x88   : > { %v434_v55 = vpop.permute.xlu1 %433  ;;  %v430_v56 = vpop.permute.xlu0 %429 }
  0x89   : > { %v2307_v57 = vsel %vm478_vm0, %v2020_v7, %v434_v55  ;;  %v2311_v58 = vsel %vm478_vm0, %v2023_v8, %v430_v56  ;;  %v956_v55 = vld [vmem:[%s3265_s5 + $0x1f8] sm:$0xff]  ;;  %v955_v56 = vld [vmem:[%s3265_s5 + $0x1f0] sm:$0xff] }
  0x8a   : > { %519 = vrot.lane.b32.xlu0 %v2307_v57, %s1932_s25  ;;  %515 = vrot.lane.b32.xlu1 %v2311_v58, %s1932_s25 }
  0x8c   : > { %v438_v59 = vpop.permute.xlu1 %437  ;;  %v436_v60 = vpop.permute.xlu0 %435 }
  0x8d   : > { %v2323_v7 = vsel %vm478_vm0, %v2032_v11, %v438_v59  ;;  %v2331_v8 = vsel %vm478_vm0, %v2035_v12, %v436_v60  ;;  %v954_v59 = vld [vmem:[%s3265_s5 + $0x1e8] sm:$0xff]  ;;  %v953_v60 = vld [vmem:[%s3265_s5 + $0x1e0] sm:$0xff] }
  0x8e   : > { %523 = vrot.lane.b32.xlu0 %v2323_v7, %s1932_s25  ;;  %517 = vrot.lane.b32.xlu1 %v2319_v5, %s1932_s25 }
  0x90   : > { %v442_v61 = vpop.permute.xlu1 %441  ;;  %v440_v62 = vpop.permute.xlu0 %439 }
  0x91   : > { %v2335_v4 = vsel %vm478_vm0, %v2044_v15, %v442_v61  ;;  %v2343_v11 = vsel %vm478_vm0, %v2047_v16, %v440_v62  ;;  %v952_v61 = vld [vmem:[%s3265_s5 + $0x1d8] sm:$0xff]  ;;  %v951_v62 = vld [vmem:[%s3265_s5 + $0x1d0] sm:$0xff] }
  0x92   : > { %527 = vrot.lane.b32.xlu0 %v2335_v4, %s1932_s25  ;;  %521 = vrot.lane.b32.xlu1 %v2331_v8, %s1932_s25 }
  0x94   : > { %v446_v63 = vpop.permute.xlu1 %445  ;;  %v444_v0 = vpop.permute.xlu0 %443 }
  0x95   : > { %v2347_v12 = vsel %vm478_vm0, %v2056_v19, %v446_v63  ;;  %v2355_v15 = vsel %vm478_vm0, %v2059_v20, %v444_v0  ;;  %v950_v63 = vld [vmem:[%s3265_s5 + $0x1c8] sm:$0xff]  ;;  %v949_v0 = vld [vmem:[%s3265_s5 + $0x1c0] sm:$0xff] }
  0x96   : > { %531 = vrot.lane.b32.xlu0 %v2347_v12, %s1932_s25  ;;  %525 = vrot.lane.b32.xlu1 %v2343_v11, %s1932_s25 }
  0x98   : > { %v450_v1 = vpop.permute.xlu1 %449  ;;  %v448_v2 = vpop.permute.xlu0 %447 }
  0x99   : > { %v2359_v16 = vsel %vm478_vm0, %v2068_v23, %v450_v1  ;;  %v2367_v19 = vsel %vm478_vm0, %v2071_v24, %v448_v2  ;;  %v948_v1 = vld [vmem:[%s3265_s5 + $0x1b8] sm:$0xff]  ;;  %v947_v2 = vld [vmem:[%s3265_s5 + $0x1b0] sm:$0xff] }
  0x9a   : > { %535 = vrot.lane.b32.xlu0 %v2359_v16, %s1932_s25  ;;  %529 = vrot.lane.b32.xlu1 %v2355_v15, %s1932_s25 }
  0x9c   : > { %v454_v3 = vpop.permute.xlu1 %453  ;;  %v452_v6 = vpop.permute.xlu0 %451 }
  0x9d   : > { %v2371_v20 = vsel %vm478_vm0, %v2080_v27, %v454_v3  ;;  %v2379_v23 = vsel %vm478_vm0, %v2083_v28, %v452_v6  ;;  %v946_v3 = vld [vmem:[%s3265_s5 + $0x1a8] sm:$0xff]  ;;  %v945_v6 = vld [vmem:[%s3265_s5 + $0x1a0] sm:$0xff] }
  0x9e   : > { %539 = vrot.lane.b32.xlu0 %v2371_v20, %s1932_s25  ;;  %533 = vrot.lane.b32.xlu1 %v2367_v19, %s1932_s25 }
  0xa0   : > { %v456_v9 = vpop.permute.xlu0 %455 }
  0xa1   : > { %v2385_v24 = vsel %vm478_vm0, %v2091_v30, %v456_v9  ;;  %v924_v30 = vld [vmem:[%s3265_s5 + $0xf8] sm:$0xff] }
  0xa2   : > { %537 = vrot.lane.b32.xlu1 %v2379_v23, %s1932_s25  ;;  %959 = vmatprep.subr.mxu1 %v924_v30  ;;  %v944_v9 = vld [vmem:[%s3265_s5 + $0x198] sm:$0xff]  ;;  %v941_v30 = vld [vmem:[%s3265_s5 + $0x180] sm:$0xff] }
  0xa4   : > { %v458_v27 = vpop.permute.xlu0 %457 }
  0xa5   : > { %v2389_v10 = vsel %vm478_vm0, %v2115_v38, %v458_v27  ;;  %v923_v38 = vld [vmem:[%s3265_s5 + $0xf0] sm:$0xff] }
  0xa6   : > { %541 = vrot.lane.b32.xlu1 %v2385_v24, %s1932_s25  ;;  %543 = vrot.lane.b32.xlu0 %v2389_v10, %s1932_s25  ;;  %v943_v27 = vld [vmem:[%s3265_s5 + $0x190] sm:$0xff] }
  0xa7   : > { %960 = vmatpush1.msra.mxu1 %v923_v38  ;;  %v940_v38 = vld [vmem:[%s3265_s5 + $0x178] sm:$0xff] }
  0xa8   : > { %v460_v28 = vpop.permute.xlu0 %459  ;;  %961 = vmatprep.subr.mxu1 %v922_v14  ;;  %v939_v14 = vld [vmem:[%s3265_s5 + $0x170] sm:$0xff] }
  0xa9   : > { %v2397_v13 = vsel %vm478_vm0, %v2133_v44, %v460_v28  ;;  %v921_v44 = vld [vmem:[%s3265_s5 + $0xe0] sm:$0xff]  ;;  %v942_v28 = vld [vmem:[%s3265_s5 + $0x188] sm:$0xff] }
  0xaa   : > { %545 = vrot.lane.b32.xlu1 %v2397_v13, %s1932_s25  ;;  %962 = vmatpush1.msra.mxu1 %v921_v44  ;;  %v938_v44 = vld [vmem:[%s3265_s5 + $0x168] sm:$0xff] }
  0xab   : > { %963 = vmatprep.subr.mxu1 %v920_v17  ;;  %v937_v17 = vld [vmem:[%s3265_s5 + $0x160] sm:$0xff] }
  0xac   : > { %964 = vmatpush1.msra.mxu1 %v919_v18  ;;  %v936_v18 = vld [vmem:[%s3265_s5 + $0x158] sm:$0xff] }
  0xad   : > { %965 = vmatprep.subr.mxu1 %v918_v21  ;;  %v935_v21 = vld [vmem:[%s3265_s5 + $0x150] sm:$0xff] }
  0xae   : > { %966 = vmatpush1.msra.mxu1 %v917_v22  ;;  %v934_v22 = vld [vmem:[%s3265_s5 + $0x148] sm:$0xff] }
  0xaf   : > { %967 = vmatprep.subr.mxu1 %v916_v25  ;;  %v933_v25 = vld [vmem:[%s3265_s5 + $0x140] sm:$0xff] }
  0xb0   : > { %968 = vmatpush1.msra.mxu1 %v915_v26  ;;  %v335_v26 = vld [vmem:[%s2573_s21] sm:$0xff] }
  0xb1   : > { %969 = vmatprep.subr.mxu1 %v914_v29  ;;  %v336_v29 = vld [vmem:[%s2573_s21 + $0x8] sm:$0xff] }
  0xb2   : > { %970 = vmatpush1.msra.mxu1 %v913_v31 }
  0xb3   : > { %971 = vmatprep.subr.mxu1 %v912_v32 }
  0xb4   : > { %972 = vmatpush1.msra.mxu1 %v911_v33 }
  0xb5   : > { %973 = vmatprep.subr.mxu1 %v910_v34 }
  0xb6   : > { %974 = vmatpush1.msra.mxu1 %v909_v35  ;;  %v337_v35 = vld [vmem:[%s2573_s21 + $0x10] sm:$0xff] }
  0xb7   : > { %975 = vmatprep.subr.mxu1 %v908_v36  ;;  %v338_v36 = vld [vmem:[%s2573_s21 + $0x18] sm:$0xff] }
  0xb8   : > { %976 = vmatpush1.msra.mxu1 %v907_v37 }
  0xb9   : > { %977 = vmatprep.subr.mxu1 %v906_v39 }
  0xba   : > { %978 = vmatpush1.msra.mxu1 %v905_v40 }
  0xbb   : > { %979 = vmatprep.subr.mxu1 %v904_v41 }
  0xbc   : > { %980 = vmatpush1.msra.mxu1 %v903_v42 }
  0xbd   : > { %981 = vmatprep.subr.mxu1 %v902_v43  ;;  %v339_v43 = vld [vmem:[%s2573_s21 + $0x20] sm:$0xff] }
  0xbe   : > { %982 = vmatpush1.msra.mxu1 %v901_v45  ;;  %v340_v45 = vld [vmem:[%s2573_s21 + $0x28] sm:$0xff] }
  0xbf   : > { %983 = vmatprep.subr.mxu1 %v900_v46  ;;  %v342_v46 = vld [vmem:[%s2573_s21 + $0x38] sm:$0xff] }
  0xc0   : > { %984 = vmatpush1.msra.mxu1 %v899_v47 }
  0xc1   : > { %985 = vmatprep.subr.mxu1 %v898_v48 }
  0xc2   : > { %986 = vmatpush1.msra.mxu1 %v897_v49 }
  0xc3   : > { %987 = vmatprep.subr.mxu1 %v896_v50  ;;  %v341_v50 = vld [vmem:[%s2573_s21 + $0x30] sm:$0xff] }
  0xc4   : > { %988 = vmatpush1.msra.mxu1 %v895_v51 }
  0xc5   : > { %989 = vmatprep.subr.mxu1 %v894_v52 }
  0xc6   : > { %990 = vmatpush1.msra.mxu1 %v893_v53  ;;  %v344_v53 = vld [vmem:[%s2573_s21 + $0x48] sm:$0xff] }
  0xc7   : > { %991 = vmatprep.subr.mxu1 %v956_v55 }
  0xc8   : > { %992 = vmatpush2.msra.mxu1 %v955_v56 }
  0xc9   : > { %993 = vmatprep.subr.mxu1 %v954_v59  ;;  %v343_v59 = vld [vmem:[%s2573_s21 + $0x40] sm:$0xff] }
  0xca   : > { %994 = vmatpush2.msra.mxu1 %v953_v60  ;;  %v346_v60 = vld [vmem:[%s2573_s21 + $0x58] sm:$0xff] }
  0xcb   : > { %995 = vmatprep.subr.mxu1 %v952_v61 }
  0xcc   : > { %996 = vmatpush2.msra.mxu1 %v951_v62 }
  0xcd   : > { %997 = vmatprep.subr.mxu1 %v950_v63 }
  0xce   : > { %998 = vmatpush2.msra.mxu1 %v949_v0  ;;  %v345_v0 = vld [vmem:[%s2573_s21 + $0x50] sm:$0xff] }
  0xcf   : > { %999 = vmatprep.subr.mxu1 %v948_v1 }
  0xd0   : > { %1000 = vmatpush2.msra.mxu1 %v947_v2 }
  0xd1   : > { %1001 = vmatprep.subr.mxu1 %v946_v3 }
  0xd2   : > { %1002 = vmatpush2.msra.mxu1 %v945_v6 }
  0xd3   : > { %1003 = vmatprep.subr.mxu1 %v944_v9  ;;  %v347_v9 = vld [vmem:[%s2573_s21 + $0x60] sm:$0xff] }
  0xd4   : > { %1004 = vmatpush2.msra.mxu1 %v943_v27 }
  0xd5   : > { %1005 = vmatprep.subr.mxu1 %v942_v28 }
  0xd6   : > { %1006 = vmatpush2.msra.mxu1 %v941_v30 }
  0xd7   : > { %1007 = vmatprep.subr.mxu1 %v940_v38 }
  0xd8   : > { %1008 = vmatpush2.msra.mxu1 %v939_v14  ;;  %v349_v14 = vld [vmem:[%s2573_s21 + $0x70] sm:$0xff] }
  0xd9   : > { %1009 = vmatprep.subr.mxu1 %v938_v44 }
  0xda   : > { %1010 = vmatpush2.msra.mxu1 %v937_v17 }
  0xdb   : > { %1011 = vmatprep.subr.mxu1 %v936_v18 }
  0xdc   : > { %1012 = vmatpush2.msra.mxu1 %v935_v21 }
  0xdd   : > { %1013 = vmatprep.subr.mxu1 %v934_v22  ;;  %v351_v22 = vld [vmem:[%s2573_s21 + $0x80] sm:$0xff] }
  0xde   : > { %1014 = vmatpush2.msra.mxu1 %v933_v25 }
  0xf8   : > { %v514_v31 = vpop.permute.xlu1 %513 }
  0xf9   : > { %v565_v32 = vsel %vm564_vm1, %v2301_v54, %v514_v31 }
  0xfa   : > { %v582_v33 = vmul.f32 %v565_v32, %v335_v26  ;;  %v583_v34 = vmul.f32 %v565_v32, %v336_v29  ;;  %v353_v32 = vld [vmem:[%s2573_s21 + $0x90] sm:$0xff] }
  0xfc   : > { %756 = vmatprep.mubr.f32.mxu0 %v583_v34  ;;  %v516_v37 = vpop.permute.xlu1 %515  ;;  %v520_v42 = vpop.permute.xlu0 %519 }
  0xfd   : > { %v566_v39 = vsel %vm564_vm1, %v2311_v58, %v516_v37  ;;  %757 = vmatmul.mubr.f32.vlgmr.msra.gmra.mxu0 %v582_v33  ;;  %v568_v47 = vsel %vm564_vm1, %v2307_v57, %v520_v42  ;;  %v355_v37 = vld [vmem:[%s2573_s21 + $0xa0] sm:$0xff] }
  0xfe   : > { %v584_v40 = vmul.f32 %v566_v39, %v337_v35  ;;  %v585_v41 = vmul.f32 %v566_v39, %v338_v36  ;;  %v589_v51 = vmul.f32 %v568_v47, %v342_v46  ;;  %v588_v57 = vmul.f32 %v568_v47, %v341_v50 }
 0x100   : > { %762 = vmatprep.mubr.f32.mxu0 %v585_v41  ;;  %v518_v54 = vpop.permute.xlu1 %517  ;;  %v524_v56 = vpop.permute.xlu0 %523 }
 0x101   : > { %v567_v48 = vsel %vm564_vm1, %v2319_v5, %v518_v54  ;;  %763 = vmatmul.mubr.f32.gmra.mxu0 %v584_v40  ;;  %v570_v61 = vsel %vm564_vm1, %v2323_v7, %v524_v56  ;;  %v350_v7 = vld [vmem:[%s2573_s21 + $0x78] sm:$0xff] }
 0x102   : > { %v586_v58 = vmul.f32 %v567_v48, %v339_v43  ;;  %v587_v49 = vmul.f32 %v567_v48, %v340_v45  ;;  %v593_v1 = vmul.f32 %v570_v61, %v346_v60  ;;  %v592_v6 = vmul.f32 %v570_v61, %v345_v0  ;;  %v357_v43 = vld [vmem:[%s2573_s21 + $0xb0] sm:$0xff]  ;;  %v359_v48 = vld [vmem:[%s2573_s21 + $0xc0] sm:$0xff] }
 0x104   : > { %768 = vmatprep.mubr.f32.mxu0 %v587_v49  ;;  %v522_v52 = vpop.permute.xlu1 %521  ;;  %v528_v3 = vpop.permute.xlu0 %527 }
 0x105   : > { %v569_v55 = vsel %vm564_vm1, %v2331_v8, %v522_v52  ;;  %769 = vmatmul.mubr.f32.gmra.mxu0 %v586_v58  ;;  %v348_v8 = vld [vmem:[%s2573_s21 + $0x68] sm:$0xff]  ;;  %v572_v28 = vsel %vm564_vm1, %v2335_v4, %v528_v3  ;;  %v354_v4 = vld [vmem:[%s2573_s21 + $0x98] sm:$0xff]  ;;  %v361_v52 = vld [vmem:[%s2573_s21 + $0xd0] sm:$0xff] }
 0x106   : > { %774 = vmatprep.mubr.f32.mxu0 %v589_v51  ;;  %v591_v5 = vmul.f32 %v569_v55, %v344_v53  ;;  %v590_v63 = vmul.f32 %v569_v55, %v343_v59  ;;  %v597_v44 = vmul.f32 %v572_v28, %v350_v7  ;;  %v596_v21 = vmul.f32 %v572_v28, %v349_v14  ;;  %v363_v59 = vld [vmem:[%s2573_s21 + $0xe0] sm:$0xff]  ;;  %v928_v7 = vld [vmem:[%s3265_s5 + $0x118] sm:$0xff]  ;;  %v927_v28 = vld [vmem:[%s3265_s5 + $0x110] sm:$0xff] }
 0x107   : > { %v682_v14 = vlaneseq }
 0x108   : > { %v526_v62 = vpop.permute.xlu1 %525  ;;  %v532_v18 = vpop.permute.xlu0 %531 }
 0x109   : > { %775 = vmatmul.mubr.f32.gmra.mxu0 %v588_v57  ;;  %v571_v2 = vsel %vm564_vm1, %v2343_v11, %v526_v62  ;;  %v352_v11 = vld [vmem:[%s2573_s21 + $0x88] sm:$0xff]  ;;  %v574_v26 = vsel %vm564_vm1, %v2347_v12, %v532_v18  ;;  %v358_v12 = vld [vmem:[%s2573_s21 + $0xb8] sm:$0xff] }
 0x10a   : > { %780 = vmatprep.mubr.f32.mxu0 %v591_v5  ;;  %v595_v27 = vmul.f32 %v571_v2, %v348_v8  ;;  %v594_v38 = vmul.f32 %v571_v2, %v347_v9  ;;  %v601_v33 = vmul.f32 %v574_v26, %v354_v4  ;;  %v600_v36 = vmul.f32 %v574_v26, %v353_v32  ;;  %v367_v2 = vld [vmem:[%s2573_s21 + $0x100] sm:$0xff]  ;;  %v931_v9 = vld [vmem:[%s3265_s5 + $0x130] sm:$0xff] }
 0x10c   : > { %v530_v30 = vpop.permute.xlu1 %529  ;;  %v536_v35 = vpop.permute.xlu0 %535 }
 0x10d   : > { %781 = vmatmul.mubr.f32.gmra.mxu0 %v590_v63  ;;  %v573_v17 = vsel %vm564_vm1, %v2355_v15, %v530_v30  ;;  %v356_v15 = vld [vmem:[%s2573_s21 + $0xa8] sm:$0xff]  ;;  %v576_v40 = vsel %vm564_vm1, %v2359_v16, %v536_v35  ;;  %v362_v16 = vld [vmem:[%s2573_s21 + $0xd8] sm:$0xff]  ;;  %v365_v63 = vld [vmem:[%s2573_s21 + $0xf0] sm:$0xff] }
 0x10e   : > { %786 = vmatprep.mubr.f32.mxu0 %v593_v1  ;;  %v599_v25 = vmul.f32 %v573_v17, %v352_v11  ;;  %v598_v31 = vmul.f32 %v573_v17, %v351_v22  ;;  %v605_v45 = vmul.f32 %v576_v40, %v358_v12  ;;  %v604_v47 = vmul.f32 %v576_v40, %v357_v43  ;;  %v368_v1 = vld [vmem:[%s2573_s21 + $0x108] sm:$0xff]  ;;  %v680_v17 = vld [vmem:[%s3264_s4] sm:$0x3] }
 0x10f   : > { %v926_v30 = vld [vmem:[%s3265_s5 + $0x108] sm:$0xff] }
 0x110   : > { %v534_v29 = vpop.permute.xlu1 %533  ;;  %v540_v46 = vpop.permute.xlu0 %539 }
 0x111   : > { %787 = vmatmul.mubr.f32.gmra.mxu0 %v592_v6  ;;  %v575_v34 = vsel %vm564_vm1, %v2367_v19, %v534_v29  ;;  %v360_v19 = vld [vmem:[%s2573_s21 + $0xc8] sm:$0xff]  ;;  %v578_v49 = vsel %vm564_vm1, %v2371_v20, %v540_v46  ;;  %v366_v20 = vld [vmem:[%s2573_s21 + $0xf8] sm:$0xff] }
 0x112   : > { %792 = vmatprep.mubr.f32.mxu0 %v595_v27  ;;  %v603_v39 = vmul.f32 %v575_v34, %v356_v15  ;;  %v602_v42 = vmul.f32 %v575_v34, %v355_v37  ;;  %v609_v53 = vmul.f32 %v578_v49, %v362_v16  ;;  %v608_v57 = vmul.f32 %v578_v49, %v361_v52  ;;  %v929_v27 = vld [vmem:[%s3265_s5 + $0x120] sm:$0xff] }
 0x114   : > { %v538_v41 = vpop.permute.xlu1 %537 }
 0x115   : > { %793 = vmatmul.mubr.f32.gmra.mxu0 %v594_v38  ;;  %v577_v54 = vsel %vm564_vm1, %v2379_v23, %v538_v41  ;;  %v364_v23 = vld [vmem:[%s2573_s21 + $0xe8] sm:$0xff]  ;;  %v925_v38 = vld [vmem:[%s3265_s5 + $0x100] sm:$0xff] }
 0x116   : > { %798 = vmatprep.mubr.f32.mxu0 %v597_v44  ;;  %v607_v58 = vmul.f32 %v577_v54, %v360_v19  ;;  %v606_v51 = vmul.f32 %v577_v54, %v359_v48  ;;  %v683_v44 = vshrl.u32 %v682_v14, 7 }
 0x118   : > { %v542_v50 = vpop.permute.xlu1 %541  ;;  %v544_v56 = vpop.permute.xlu0 %543  ;;  %v684_v11 = vsub.s32 0, %v683_v44  ;;  %v688_v18 = vsub.s32 1, %v683_v44 }
 0x119   : > { %799 = vmatmul.mubr.f32.gmra.mxu0 %v596_v21  ;;  %v579_v55 = vsel %vm564_vm1, %v2385_v24, %v542_v50  ;;  %v580_v60 = vsel %vm564_vm1, %v2389_v10, %v544_v56  ;;  %v932_v10 = vld [vmem:[%s3265_s5 + $0x138] sm:$0xff] }
 0x11a   : > { %804 = vmatprep.mubr.f32.mxu0 %v599_v25  ;;  %v611_v5 = vmul.f32 %v579_v55, %v364_v23  ;;  %v610_v62 = vmul.f32 %v579_v55, %v363_v59  ;;  %v613_v0 = vmul.f32 %v580_v60, %v366_v20  ;;  %v612_v8 = vmul.f32 %v580_v60, %v365_v63 }
 0x11b   : > { %1015 = vmatprep.subr.mxu1 %v932_v10  ;;  %v2670_v21 = vrot.slane %v680_v17, %v684_v11  ;;  %v2672_v22 = vrot.slane %v680_v17, %v688_v18 }
 0x11c   : > { %v546_v61 = vpop.permute.xlu1 %545  ;;  %1016 = vmatpush2.msra.mxu1 %v931_v9 }
 0x11d   : > { %805 = vmatmul.mubr.f32.gmra.mxu0 %v598_v31  ;;  %v581_v24 = vsel %vm564_vm1, %v2397_v13, %v546_v61  ;;  %v930_v13 = vld [vmem:[%s3265_s5 + $0x128] sm:$0xff] }
 0x11e   : > { %810 = vmatprep.mubr.f32.mxu0 %v601_v33  ;;  %v615_v3 = vmul.f32 %v581_v24, %v368_v1  ;;  %v614_v6 = vmul.f32 %v581_v24, %v367_v2  ;;  %1017 = vmatprep.subr.mxu1 %v930_v13 }
 0x11f   : > { %1018 = vmatpush2.msra.mxu1 %v929_v27 }
 0x120   : > { %1019 = vmatprep.subr.mxu1 %v928_v7 }
 0x121   : > { %811 = vmatmul.mubr.f32.gmra.mxu0 %v600_v36  ;;  %1020 = vmatpush2.msra.mxu1 %v927_v28 }
 0x122   : > { %816 = vmatprep.mubr.f32.mxu0 %v603_v39  ;;  %1021 = vmatprep.subr.mxu1 %v926_v30 }
 0x123   : > { %1022 = vmatpush2.msra.mxu1 %v925_v38 }
 0x125   : > { %817 = vmatmul.mubr.f32.gmra.mxu0 %v602_v42 }
 0x126   : > { %822 = vmatprep.mubr.f32.mxu0 %v605_v45 }
 0x129   : > { %823 = vmatmul.mubr.f32.gmra.mxu0 %v604_v47 }
 0x12a   : > { %828 = vmatprep.mubr.f32.mxu0 %v607_v58 }
 0x12d   : > { %829 = vmatmul.mubr.f32.gmra.mxu0 %v606_v51 }
 0x12e   : > { %834 = vmatprep.mubr.f32.mxu0 %v609_v53 }
 0x131   : > { %835 = vmatmul.mubr.f32.gmra.mxu0 %v608_v57 }
 0x132   : > { %840 = vmatprep.mubr.f32.mxu0 %v611_v5 }
 0x135   : > { %841 = vmatmul.mubr.f32.gmra.mxu0 %v610_v62 }
 0x136   : > { %846 = vmatprep.mubr.f32.mxu0 %v613_v0 }
 0x139   : > { %847 = vmatmul.mubr.f32.gmra.mxu0 %v612_v8 }
 0x13a   : > { %852 = vmatprep.mubr.f32.mxu0 %v615_v3 }
 0x13d   : > { %853 = vmatmul.mubr.f32.gmra.mxu0 %v614_v6 }
 0x1bd   : > { %v758_v25 = vpop.f32.mrf.mxu0 }
 0x1be   : > { %v759_v4 = vadd.f32 %v758_v25, %v2670_v21 }
 0x1bf   : > { %v760_v26 = vpop.f32.mrf.mxu0 }
 0x1c0   : > { %v761_v29 = vadd.f32 %v760_v26, %v2672_v22  ;;  %v859_v33 = vmax.f32 %v759_v4, 0.0 }
 0x1c1   : > { %v764_v31 = vpop.f32.mrf.mxu0 }
 0x1c2   : > { %v860_v32 = vmax.f32 %v761_v29, 0.0  ;;  %v765_v15 = vadd.f32 %v764_v31, %v2670_v21 }
 0x1c3   : > { %v766_v34 = vpop.f32.mrf.mxu0 }
 0x1c4   : > { %v767_v35 = vadd.f32 %v766_v34, %v2672_v22  ;;  %1023 = vmatprep.mubr.f32.mxu1 %v860_v32  ;;  %v861_v39 = vmax.f32 %v765_v15, 0.0 }
 0x1c5   : > { %v770_v36 = vpop.f32.mrf.mxu0  ;;  %1024 = vmatmul.mubr.f32.vlgmr.msra.gmra.mxu1 %v859_v33 }
 0x1c6   : > { %v862_v37 = vmax.f32 %v767_v35, 0.0  ;;  %v771_v12 = vadd.f32 %v770_v36, %v2670_v21 }
 0x1c7   : > { %v772_v40 = vpop.f32.mrf.mxu0 }
 0x1c8   : > { %v773_v41 = vadd.f32 %v772_v40, %v2672_v22  ;;  %1029 = vmatprep.mubr.f32.mxu1 %v862_v37  ;;  %v863_v45 = vmax.f32 %v771_v12, 0.0 }
 0x1c9   : > { %v776_v42 = vpop.f32.mrf.mxu0  ;;  %1030 = vmatmul.mubr.f32.gmra.mxu1 %v861_v39 }
 0x1ca   : > { %v864_v43 = vmax.f32 %v773_v41, 0.0  ;;  %v777_v19 = vadd.f32 %v776_v42, %v2670_v21 }
 0x1cb   : > { %v778_v54 = vpop.f32.mrf.mxu0 }
 0x1cc   : > { %v779_v46 = vadd.f32 %v778_v54, %v2672_v22  ;;  %1035 = vmatprep.mubr.f32.mxu1 %v864_v43  ;;  %v865_v58 = vmax.f32 %v777_v19, 0.0 }
 0x1cd   : > { %v782_v47 = vpop.f32.mrf.mxu0  ;;  %1036 = vmatmul.mubr.f32.gmra.mxu1 %v863_v45 }
 0x1ce   : > { %v866_v48 = vmax.f32 %v779_v46, 0.0  ;;  %v783_v16 = vadd.f32 %v782_v47, %v2670_v21 }
 0x1cf   : > { %v784_v49 = vpop.f32.mrf.mxu0 }
 0x1d0   : > { %v785_v50 = vadd.f32 %v784_v49, %v2672_v22  ;;  %1041 = vmatprep.mubr.f32.mxu1 %v866_v48  ;;  %v867_v53 = vmax.f32 %v783_v16, 0.0 }
 0x1d1   : > { %v788_v51 = vpop.f32.mrf.mxu0  ;;  %1042 = vmatmul.mubr.f32.gmra.mxu1 %v865_v58 }
 0x1d2   : > { %v868_v52 = vmax.f32 %v785_v50, 0.0  ;;  %v789_v23 = vadd.f32 %v788_v51, %v2670_v21 }
 0x1d3   : > { %v790_v55 = vpop.f32.mrf.mxu0 }
 0x1d4   : > { %v791_v56 = vadd.f32 %v790_v55, %v2672_v22  ;;  %1047 = vmatprep.mubr.f32.mxu1 %v868_v52  ;;  %v869_v5 = vmax.f32 %v789_v23, 0.0 }
 0x1d5   : > { %v794_v57 = vpop.f32.mrf.mxu0  ;;  %1048 = vmatmul.mubr.f32.gmra.mxu1 %v867_v53 }
 0x1d6   : > { %v870_v59 = vmax.f32 %v791_v56, 0.0  ;;  %v795_v20 = vadd.f32 %v794_v57, %v2670_v21 }
 0x1d7   : > { %v796_v60 = vpop.f32.mrf.mxu0 }
 0x1d8   : > { %v797_v61 = vadd.f32 %v796_v60, %v2672_v22  ;;  %1053 = vmatprep.mubr.f32.mxu1 %v870_v59  ;;  %v871_v0 = vmax.f32 %v795_v20, 0.0 }
 0x1d9   : > { %v800_v62 = vpop.f32.mrf.mxu0  ;;  %1054 = vmatmul.mubr.f32.gmra.mxu1 %v869_v5 }
 0x1da   : > { %v872_v63 = vmax.f32 %v797_v61, 0.0  ;;  %v801_v1 = vadd.f32 %v800_v62, %v2670_v21  ;;  %v2708_v62 = vstv %s957_s20 }
 0x1db   : > { %v802_v24 = vpop.f32.mrf.mxu0 }
 0x1dc   : > { %v803_v8 = vadd.f32 %v802_v24, %v2672_v22  ;;  %1059 = vmatprep.mubr.f32.mxu1 %v872_v63  ;;  %v873_v6 = vmax.f32 %v801_v1, 0.0 }
 0x1dd   : > { %v806_v2 = vpop.f32.mrf.mxu0  ;;  %1060 = vmatmul.mubr.f32.gmra.mxu1 %v871_v0 }
 0x1de   : > { %v874_v3 = vmax.f32 %v803_v8, 0.0  ;;  %v807_v10 = vadd.f32 %v806_v2, %v2670_v21 }
 0x1df   : > { %v808_v9 = vpop.f32.mrf.mxu0 }
 0x1e0   : > { %v809_v13 = vadd.f32 %v808_v9, %v2672_v22  ;;  %1065 = vmatprep.mubr.f32.mxu1 %v874_v3  ;;  %v875_v28 = vmax.f32 %v807_v10, 0.0 }
 0x1e1   : > { %v812_v27 = vpop.f32.mrf.mxu0  ;;  %1066 = vmatmul.mubr.f32.gmra.mxu1 %v873_v6 }
 0x1e2   : > { %v876_v7 = vmax.f32 %v809_v13, 0.0  ;;  %v813_v30 = vadd.f32 %v812_v27, %v2670_v21 }
 0x1e3   : > { %v814_v38 = vpop.f32.mrf.mxu0 }
 0x1e4   : > { %v815_v14 = vadd.f32 %v814_v38, %v2672_v22  ;;  %1071 = vmatprep.mubr.f32.mxu1 %v876_v7  ;;  %v877_v17 = vmax.f32 %v813_v30, 0.0 }
 0x1e5   : > { %v818_v44 = vpop.f32.mrf.mxu0  ;;  %1072 = vmatmul.mubr.f32.gmra.mxu1 %v875_v28 }
 0x1e6   : > { %v878_v11 = vmax.f32 %v815_v14, 0.0  ;;  %v819_v18 = vadd.f32 %v818_v44, %v2670_v21 }
 0x1e7   : > { %v820_v25 = vpop.f32.mrf.mxu0 }
 0x1e8   : > { %v821_v4 = vadd.f32 %v820_v25, %v2672_v22  ;;  %1077 = vmatprep.mubr.f32.mxu1 %v878_v11  ;;  %v879_v31 = vmax.f32 %v819_v18, 0.0 }
 0x1e9   : > { %v824_v26 = vpop.f32.mrf.mxu0  ;;  %1078 = vmatmul.mubr.f32.gmra.mxu1 %v877_v17 }
 0x1ea   : > { %v880_v29 = vmax.f32 %v821_v4, 0.0  ;;  %v825_v32 = vadd.f32 %v824_v26, %v2670_v21 }
 0x1eb   : > { %v826_v33 = vpop.f32.mrf.mxu0 }
 0x1ec   : > { %v827_v15 = vadd.f32 %v826_v33, %v2672_v22  ;;  %1083 = vmatprep.mubr.f32.mxu1 %v880_v29  ;;  %v881_v36 = vmax.f32 %v825_v32, 0.0 }
 0x1ed   : > { %v830_v34 = vpop.f32.mrf.mxu0  ;;  %1084 = vmatmul.mubr.f32.gmra.mxu1 %v879_v31 }
 0x1ee   : > { %v882_v35 = vmax.f32 %v827_v15, 0.0  ;;  %v831_v37 = vadd.f32 %v830_v34, %v2670_v21 }
 0x1ef   : > { %v832_v39 = vpop.f32.mrf.mxu0 }
 0x1f0   : > { %v833_v12 = vadd.f32 %v832_v39, %v2672_v22  ;;  %1089 = vmatprep.mubr.f32.mxu1 %v882_v35  ;;  %v883_v42 = vmax.f32 %v831_v37, 0.0 }
 0x1f1   : > { %v836_v40 = vpop.f32.mrf.mxu0  ;;  %1090 = vmatmul.mubr.f32.gmra.mxu1 %v881_v36 }
 0x1f2   : > { %v884_v41 = vmax.f32 %v833_v12, 0.0  ;;  %v837_v43 = vadd.f32 %v836_v40, %v2670_v21 }
 0x1f3   : > { %v838_v45 = vpop.f32.mrf.mxu0 }
 0x1f4   : > { %v839_v19 = vadd.f32 %v838_v45, %v2672_v22  ;;  %1095 = vmatprep.mubr.f32.mxu1 %v884_v41  ;;  %v885_v47 = vmax.f32 %v837_v43, 0.0 }
 0x1f5   : > { %v842_v54 = vpop.f32.mrf.mxu0  ;;  %1096 = vmatmul.mubr.f32.gmra.mxu1 %v883_v42 }
 0x1f6   : > { %v886_v46 = vmax.f32 %v839_v19, 0.0  ;;  %v843_v48 = vadd.f32 %v842_v54, %v2670_v21 }
 0x1f7   : > { %v844_v58 = vpop.f32.mrf.mxu0 }
 0x1f8   : > { %v845_v16 = vadd.f32 %v844_v58, %v2672_v22  ;;  %1101 = vmatprep.mubr.f32.mxu1 %v886_v46  ;;  %v887_v51 = vmax.f32 %v843_v48, 0.0 }
 0x1f9   : > { %v848_v49 = vpop.f32.mrf.mxu0  ;;  %1102 = vmatmul.mubr.f32.gmra.mxu1 %v885_v47 }
 0x1fa   : > { %v888_v50 = vmax.f32 %v845_v16, 0.0  ;;  %v849_v52 = vadd.f32 %v848_v49, %v2670_v21 }
 0x1fb   : > { %v850_v53 = vpop.f32.mrf.mxu0 }
 0x1fc   : > { %v851_v23 = vadd.f32 %v850_v53, %v2672_v22  ;;  %1107 = vmatprep.mubr.f32.mxu1 %v888_v50  ;;  %v889_v57 = vmax.f32 %v849_v52, 0.0 }
 0x1fd   : > { %v854_v55 = vpop.f32.mrf.mxu0  ;;  %1108 = vmatmul.mubr.f32.gmra.mxu1 %v887_v51 }
 0x1fe   : > { %v890_v56 = vmax.f32 %v851_v23, 0.0  ;;  %v855_v59 = vadd.f32 %v854_v55, %v2670_v21 }
 0x1ff   : > { %v856_v5 = vpop.f32.mrf.mxu0 }
 0x200   : > { %v857_v20 = vadd.f32 %v856_v5, %v2672_v22  ;;  %1113 = vmatprep.mubr.f32.mxu1 %v890_v56  ;;  %v891_v61 = vmax.f32 %v855_v59, 0.0 }
 0x201   : > { %1114 = vmatmul.mubr.f32.gmra.mxu1 %v889_v57 }
 0x202   : > { %v892_v60 = vmax.f32 %v857_v20, 0.0 }
 0x204   : > { %1119 = vmatprep.mubr.f32.mxu1 %v892_v60 }
 0x205   : > { %1120 = vmatmul.mubr.f32.gmra.mxu1 %v891_v61 }
 0x285   : > { %v1025_v63 = vpop.f32.mrf.mxu1 }
 0x286   : > { %v2711_v1 = vadd.f32 %v1025_v63, %v2708_v62 }
 0x287   : > { %v1027_v0 = vpop.f32.mrf.mxu1 }
 0x288   : > { %v2714_v24 = vadd.f32 %v1027_v0, %v2708_v62 }
 0x289   : > { %v1031_v21 = vpop.f32.mrf.mxu1 }
 0x28a   : > { %v1126_v22 = vmax.f32 %v2711_v1, %v2714_v24  ;;  %v2719_v2 = vadd.f32 %v1031_v21, %v2708_v62 }
 0x28b   : > { %v1033_v8 = vpop.f32.mrf.mxu1 }
 0x28c   : > { %v2722_v3 = vadd.f32 %v1033_v8, %v2708_v62  ;;  %1127 = vmax.xlane.f32.xlu0 %v1126_v22 }
 0x28d   : > { %v1037_v6 = vpop.f32.mrf.mxu1 }
 0x28e   : > { %v1129_v10 = vmax.f32 %v2719_v2, %v2722_v3  ;;  %v2742_v35 = vadd.f32 %v1037_v6, %v2708_v62 }
 0x28f   : > { %v1039_v9 = vpop.f32.mrf.mxu1 }
 0x290   : > { %1130 = vmax.xlane.f32.xlu1 %v1129_v10  ;;  %v2737_v33 = vadd.f32 %v1039_v9, %v2708_v62 }
 0x291   : > { %v1043_v13 = vpop.f32.mrf.mxu1 }
 0x292   : > { %v1132_v41 = vmax.f32 %v2742_v35, %v2737_v33  ;;  %v2758_v43 = vadd.f32 %v1043_v13, %v2708_v62 }
 0x293   : > { %v1045_v27 = vpop.f32.mrf.mxu1 }
 0x294   : > { %v2751_v12 = vadd.f32 %v1045_v27, %v2708_v62 }
 0x295   : > { %v1049_v7 = vpop.f32.mrf.mxu1 }
 0x296   : > { %v1135_v47 = vmax.f32 %v2758_v43, %v2751_v12  ;;  %v2774_v16 = vadd.f32 %v1049_v7, %v2708_v62 }
 0x297   : > { %v1051_v28 = vpop.f32.mrf.mxu1 }
 0x298   : > { %v2767_v46 = vadd.f32 %v1051_v28, %v2708_v62 }
 0x299   : > { %v1055_v30 = vpop.f32.mrf.mxu1 }
 0x29a   : > { %v1138_v53 = vmax.f32 %v2774_v16, %v2767_v46  ;;  %v2790_v56 = vadd.f32 %v1055_v30, %v2708_v62 }
 0x29b   : > { %v1057_v38 = vpop.f32.mrf.mxu1 }
 0x29c   : > { %v2783_v52 = vadd.f32 %v1057_v38, %v2708_v62 }
 0x29d   : > { %v1061_v14 = vpop.f32.mrf.mxu1 }
 0x29e   : > { %v1141_v60 = vmax.f32 %v2790_v56, %v2783_v52  ;;  %v2806_v0 = vadd.f32 %v1061_v14, %v2708_v62 }
 0x29f   : > { %v1063_v44 = vpop.f32.mrf.mxu1 }
 0x2a0   : > { %v2799_v20 = vadd.f32 %v1063_v44, %v2708_v62 }
 0x2a1   : > { %v1067_v11 = vpop.f32.mrf.mxu1 }
 0x2a2   : > { %v1144_v10 = vmax.f32 %v2806_v0, %v2799_v20  ;;  %v2822_v27 = vadd.f32 %v1067_v11, %v2708_v62 }
 0x2a3   : > { %v1069_v17 = vpop.f32.mrf.mxu1 }
 0x2a4   : > { %v2815_v6 = vadd.f32 %v1069_v17, %v2708_v62 }
 0x2a5   : > { %v2726_v18 = vpop.f32.mrf.mxu1 }
 0x2a6   : > { %v1147_v14 = vmax.f32 %v2822_v27, %v2815_v6  ;;  %v2840_v17 = vadd.f32 %v2726_v18, %v2708_v62  ;;  %v1447_v18 = vld [vmem:[%s3266_s6 + $0x78] sm:$0xff] }
 0x2a7   : > { %v2728_v25 = vpop.f32.mrf.mxu1 }
 0x2a8   : > { %v2832_v38 = vadd.f32 %v2728_v25, %v2708_v62 }
 0x2a9   : > { %v1079_v4 = vpop.f32.mrf.mxu1 }
 0x2aa   : > { %v2731_v29 = vadd.f32 %v1079_v4, %v2708_v62  ;;  %v1150_v25 = vmax.f32 %v2840_v17, %v2832_v38 }
 0x2ab   : > { %v1081_v26 = vpop.f32.mrf.mxu1 }
 0x2ac   : > { %v2734_v31 = vadd.f32 %v1081_v26, %v2708_v62 }
 0x2ad   : > { %v1085_v32 = vpop.f32.mrf.mxu1 }
 0x2ae   : > { %v1153_v15 = vmax.f32 %v2731_v29, %v2734_v31  ;;  %v2745_v36 = vadd.f32 %v1085_v32, %v2708_v62 }
 0x2af   : > { %v1087_v34 = vpop.f32.mrf.mxu1 }
 0x2b0   : > { %v2748_v37 = vadd.f32 %v1087_v34, %v2708_v62  ;;  %1154 = vmax.xlane.f32.xlu0 %v1153_v15  ;;  %v1933_v15 = vmov 0.0   ;;  %v1445_v34 = vld [vmem:[%s3266_s6 + $0x68] sm:$0xff] }
 0x2b1   : > { %v1091_v39 = vpop.f32.mrf.mxu1  ;;  %1464 = vmatprep.subr.mxu0 %v1933_v15  ;;  %1712 = vmatprep.subr.mxu1 %v1933_v15 }
 0x2b2   : > { %v1156_v40 = vmax.f32 %v2745_v36, %v2748_v37  ;;  %v2761_v45 = vadd.f32 %v1091_v39, %v2708_v62  ;;  %1465 = vmatpush1.msra.mxu0 %v1447_v18  ;;  %1744 = vmatpush1.msra.mxu1 %v1447_v18  ;;  %v1444_v39 = vld [vmem:[%s3266_s6 + $0x60] sm:$0xff] }
 0x2b3   : > { %v1093_v42 = vpop.f32.mrf.mxu1  ;;  %1466 = vmatprep.subr.mxu0 %v1933_v15  ;;  %1713 = vmatprep.subr.mxu1 %v1933_v15 }
 0x2b4   : > { %v2764_v19 = vadd.f32 %v1093_v42, %v2708_v62  ;;  %1157 = vmax.xlane.f32.xlu1 %v1156_v40  ;;  %1133 = vmax.xlane.f32.xlu0 %v1132_v41  ;;  %v1443_v40 = vld [vmem:[%s3266_s6 + $0x58] sm:$0xff]  ;;  %v1442_v41 = vld [vmem:[%s3266_s6 + $0x50] sm:$0xff]  ;;  %v1441_v42 = vld [vmem:[%s3266_s6 + $0x48] sm:$0xff] }
 0x2b5   : > { %v1097_v54 = vpop.f32.mrf.mxu1 }
 0x2b6   : > { %v1159_v48 = vmax.f32 %v2761_v45, %v2764_v19  ;;  %v2777_v49 = vadd.f32 %v1097_v54, %v2708_v62  ;;  %v1440_v54 = vld [vmem:[%s3266_s6 + $0x40] sm:$0xff] }
 0x2b7   : > { %v1099_v58 = vpop.f32.mrf.mxu1 }
 0x2b8   : > { %v2780_v50 = vadd.f32 %v1099_v58, %v2708_v62  ;;  %1136 = vmax.xlane.f32.xlu0 %v1135_v47  ;;  %1160 = vmax.xlane.f32.xlu1 %v1159_v48  ;;  %v1439_v47 = vld [vmem:[%s3266_s6 + $0x38] sm:$0xff]  ;;  %v1438_v48 = vld [vmem:[%s3266_s6 + $0x30] sm:$0xff]  ;;  %v1437_v58 = vld [vmem:[%s3266_s6 + $0x28] sm:$0xff] }
 0x2b9   : > { %v1103_v51 = vpop.f32.mrf.mxu1 }
 0x2ba   : > { %v1162_v23 = vmax.f32 %v2777_v49, %v2780_v50  ;;  %v2793_v57 = vadd.f32 %v1103_v51, %v2708_v62  ;;  %v1436_v51 = vld [vmem:[%s3266_s6 + $0x20] sm:$0xff] }
 0x2bb   : > { %v1105_v55 = vpop.f32.mrf.mxu1 }
 0x2bc   : > { %v2796_v59 = vadd.f32 %v1105_v55, %v2708_v62  ;;  %1139 = vmax.xlane.f32.xlu0 %v1138_v53  ;;  %1163 = vmax.xlane.f32.xlu1 %v1162_v23  ;;  %v1435_v53 = vld [vmem:[%s3266_s6 + $0x18] sm:$0xff]  ;;  %v1434_v23 = vld [vmem:[%s3266_s6 + $0x10] sm:$0xff]  ;;  %v1433_v55 = vld [vmem:[%s3266_s6 + $0x8] sm:$0xff] }
 0x2bd   : > { %v1109_v5 = vpop.f32.mrf.mxu1 }
 0x2be   : > { %v1165_v61 = vmax.f32 %v2793_v57, %v2796_v59  ;;  %v2809_v21 = vadd.f32 %v1109_v5, %v2708_v62  ;;  %v1432_v5 = vld [vmem:[%s3266_s6] sm:$0xff] }
 0x2bf   : > { %v1111_v63 = vpop.f32.mrf.mxu1 }
 0x2c0   : > { %v2812_v22 = vadd.f32 %v1111_v63, %v2708_v62  ;;  %1142 = vmax.xlane.f32.xlu0 %v1141_v60  ;;  %1166 = vmax.xlane.f32.xlu1 %v1165_v61  ;;  %v1463_v60 = vld [vmem:[%s3266_s6 + $0xf8] sm:$0xff]  ;;  %v1462_v61 = vld [vmem:[%s3266_s6 + $0xf0] sm:$0xff]  ;;  %v1461_v63 = vld [vmem:[%s3266_s6 + $0xe8] sm:$0xff] }
 0x2c1   : > { %v1115_v8 = vpop.f32.mrf.mxu1 }
 0x2c2   : > { %v1168_v9 = vmax.f32 %v2809_v21, %v2812_v22  ;;  %v2825_v7 = vadd.f32 %v1115_v8, %v2708_v62  ;;  %v1460_v8 = vld [vmem:[%s3266_s6 + $0xe0] sm:$0xff] }
 0x2c3   : > { %v1117_v13 = vpop.f32.mrf.mxu1 }
 0x2c4   : > { %v2828_v28 = vadd.f32 %v1117_v13, %v2708_v62  ;;  %1145 = vmax.xlane.f32.xlu0 %v1144_v10  ;;  %1169 = vmax.xlane.f32.xlu1 %v1168_v9  ;;  %v1459_v10 = vld [vmem:[%s3266_s6 + $0xd8] sm:$0xff] }
 0x2c5   : > { %v1121_v30 = vpop.f32.mrf.mxu1 }
 0x2c6   : > { %v1171_v44 = vmax.f32 %v2825_v7, %v2828_v28  ;;  %v2843_v4 = vadd.f32 %v1121_v30, %v2708_v62 }
 0x2c7   : > { %v1123_v11 = vpop.f32.mrf.mxu1 }
 0x2c8   : > { %v2846_v26 = vadd.f32 %v1123_v11, %v2708_v62  ;;  %1148 = vmax.xlane.f32.xlu0 %v1147_v14  ;;  %1172 = vmax.xlane.f32.xlu1 %v1171_v44  ;;  %v1446_v62 = vld [vmem:[%s3266_s6 + $0x70] sm:$0xff] }
 0x2c9   : > { %1467 = vmatpush1.msra.mxu0 %v1446_v62  ;;  %1745 = vmatpush1.msra.mxu1 %v1446_v62 }
 0x2ca   : > { %v1174_v32 = vmax.f32 %v2843_v4, %v2846_v26  ;;  %1468 = vmatprep.subr.mxu0 %v1933_v15  ;;  %1714 = vmatprep.subr.mxu1 %v1933_v15 }
 0x2cb   : > { %1469 = vmatpush1.msra.mxu0 %v1445_v34  ;;  %1746 = vmatpush1.msra.mxu1 %v1445_v34 }
 0x2cc   : > { %1151 = vmax.xlane.f32.xlu0 %v1150_v25  ;;  %1175 = vmax.xlane.f32.xlu1 %v1174_v32 }
 0x2cd   : > { %1470 = vmatprep.subr.mxu0 %v1933_v15  ;;  %1715 = vmatprep.subr.mxu1 %v1933_v15 }
 0x2ce   : > { %1471 = vmatpush1.msra.mxu0 %v1444_v39  ;;  %1747 = vmatpush1.msra.mxu1 %v1444_v39 }
 0x2cf   : > { %1472 = vmatprep.subr.mxu0 %v1933_v15  ;;  %1716 = vmatprep.subr.mxu1 %v1933_v15 }
 0x2d0   : > { %1473 = vmatpush1.msra.mxu0 %v1443_v40  ;;  %1748 = vmatpush1.msra.mxu1 %v1443_v40 }
 0x2d1   : > { %1474 = vmatprep.subr.mxu0 %v1933_v15  ;;  %1717 = vmatprep.subr.mxu1 %v1933_v15 }
 0x2d2   : > { %1475 = vmatpush1.msra.mxu0 %v1442_v41  ;;  %1749 = vmatpush1.msra.mxu1 %v1442_v41  ;;  %v1457_v41 = vld [vmem:[%s3266_s6 + $0xc8] sm:$0xff] }
 0x2d3   : > { %1476 = vmatprep.subr.mxu0 %v1933_v15  ;;  %1718 = vmatprep.subr.mxu1 %v1933_v15 }
 0x2d4   : > { %1477 = vmatpush1.msra.mxu0 %v1441_v42  ;;  %1750 = vmatpush1.msra.mxu1 %v1441_v42 }
 0x2d5   : > { %1478 = vmatprep.subr.mxu0 %v1933_v15  ;;  %1719 = vmatprep.subr.mxu1 %v1933_v15 }
 0x2d6   : > { %1479 = vmatpush1.msra.mxu0 %v1440_v54  ;;  %1751 = vmatpush1.msra.mxu1 %v1440_v54 }
 0x2d7   : > { %1480 = vmatprep.subr.mxu0 %v1933_v15  ;;  %1720 = vmatprep.subr.mxu1 %v1933_v15 }
 0x2d8   : > { %1481 = vmatpush1.msra.mxu0 %v1439_v47  ;;  %1752 = vmatpush1.msra.mxu1 %v1439_v47 }
 0x2d9   : > { %1482 = vmatprep.subr.mxu0 %v1933_v15  ;;  %1721 = vmatprep.subr.mxu1 %v1933_v15 }
 0x2da   : > { %1483 = vmatpush1.msra.mxu0 %v1438_v48  ;;  %1753 = vmatpush1.msra.mxu1 %v1438_v48  ;;  %v1456_v48 = vld [vmem:[%s3266_s6 + $0xc0] sm:$0xff] }
 0x2db   : > { %1484 = vmatprep.subr.mxu0 %v1933_v15  ;;  %1722 = vmatprep.subr.mxu1 %v1933_v15 }
 0x2dc   : > { %1485 = vmatpush1.msra.mxu0 %v1437_v58  ;;  %1754 = vmatpush1.msra.mxu1 %v1437_v58 }
 0x2dd   : > { %1486 = vmatprep.subr.mxu0 %v1933_v15  ;;  %1723 = vmatprep.subr.mxu1 %v1933_v15 }
 0x2de   : > { %1487 = vmatpush1.msra.mxu0 %v1436_v51  ;;  %1755 = vmatpush1.msra.mxu1 %v1436_v51 }
 0x2df   : > { %1488 = vmatprep.subr.mxu0 %v1933_v15  ;;  %1724 = vmatprep.subr.mxu1 %v1933_v15 }
 0x2e0   : > { %1489 = vmatpush1.msra.mxu0 %v1435_v53  ;;  %1756 = vmatpush1.msra.mxu1 %v1435_v53 }
 0x2e1   : > { %1490 = vmatprep.subr.mxu0 %v1933_v15  ;;  %1725 = vmatprep.subr.mxu1 %v1933_v15 }
 0x2e2   : > { %1491 = vmatpush1.msra.mxu0 %v1434_v23  ;;  %1757 = vmatpush1.msra.mxu1 %v1434_v23 }
 0x2e3   : > { %1492 = vmatprep.subr.mxu0 %v1933_v15  ;;  %1726 = vmatprep.subr.mxu1 %v1933_v15 }
 0x2e4   : > { %1493 = vmatpush1.msra.mxu0 %v1433_v55  ;;  %1758 = vmatpush1.msra.mxu1 %v1433_v55 }
 0x2e5   : > { %1494 = vmatprep.subr.mxu0 %v1933_v15  ;;  %1727 = vmatprep.subr.mxu1 %v1933_v15 }
 0x2e6   : > { %1495 = vmatpush1.msra.mxu0 %v1432_v5  ;;  %1759 = vmatpush1.msra.mxu1 %v1432_v5 }
 0x2e7   : > { %1496 = vmatprep.subr.mxu0 %v1933_v15  ;;  %1728 = vmatprep.subr.mxu1 %v1933_v15 }
 0x2e8   : > { %1497 = vmatpush2.msra.mxu0 %v1463_v60  ;;  %1760 = vmatpush2.msra.mxu1 %v1463_v60  ;;  %v1454_v60 = vld [vmem:[%s3266_s6 + $0xb0] sm:$0xff] }
 0x2e9   : > { %1498 = vmatprep.subr.mxu0 %v1933_v15  ;;  %1729 = vmatprep.subr.mxu1 %v1933_v15 }
 0x2ea   : > { %1499 = vmatpush2.msra.mxu0 %v1462_v61  ;;  %1761 = vmatpush2.msra.mxu1 %v1462_v61 }
 0x2eb   : > { %1500 = vmatprep.subr.mxu0 %v1933_v15  ;;  %1730 = vmatprep.subr.mxu1 %v1933_v15 }
 0x2ec   : > { %1501 = vmatpush2.msra.mxu0 %v1461_v63  ;;  %1762 = vmatpush2.msra.mxu1 %v1461_v63 }
 0x2ed   : > { %1502 = vmatprep.subr.mxu0 %v1933_v15  ;;  %1731 = vmatprep.subr.mxu1 %v1933_v15 }
 0x2ee   : > { %1503 = vmatpush2.msra.mxu0 %v1460_v8  ;;  %1763 = vmatpush2.msra.mxu1 %v1460_v8 }
 0x2ef   : > { %1504 = vmatprep.subr.mxu0 %v1933_v15  ;;  %1732 = vmatprep.subr.mxu1 %v1933_v15 }
 0x2f0   : > { %1505 = vmatpush2.msra.mxu0 %v1459_v10  ;;  %1764 = vmatpush2.msra.mxu1 %v1459_v10 }
 0x2f1   : > { %1506 = vmatprep.subr.mxu0 %v1933_v15  ;;  %1733 = vmatprep.subr.mxu1 %v1933_v15 }
 0x315   : > { %v1128_v9 = vpop.xlane.xlu0 %1127 }
 0x316   : > { %v1177_v13 = vsub.f32 %v2711_v1, %v1128_v9  ;;  %v1178_v30 = vsub.f32 %v2714_v24, %v1128_v9  ;;  %v1453_v9 = vld [vmem:[%s3266_s6 + $0xa8] sm:$0xff] }
 0x318   : > { %v1211_v14 = vmul.f32 1.442695, %v1177_v13  ;;  %v1213_v44 = vmul.f32 1.442695, %v1178_v30 }
 0x319   : > { %v1131_v11 = vpop.xlane.xlu1 %1130 }
 0x31a   : > { %1787 = vpow2.f32 %v1211_v14  ;;  %v1179_v25 = vsub.f32 %v2719_v2, %v1131_v11  ;;  %v1180_v1 = vsub.f32 %v2722_v3, %v1131_v11  ;;  %v1458_v3 = vld [vmem:[%s3266_s6 + $0xd0] sm:$0xff]  ;;  %v1452_v14 = vld [vmem:[%s3266_s6 + $0xa0] sm:$0xff] }
 0x31b   : > { %1789 = vpow2.f32 %v1213_v44  ;;  %1507 = vmatpush2.msra.mxu0 %v1458_v3  ;;  %1765 = vmatpush2.msra.mxu1 %v1458_v3 }
 0x31c   : > { %v1215_v24 = vmul.f32 1.442695, %v1179_v25  ;;  %v1217_v32 = vmul.f32 1.442695, %v1180_v1  ;;  %1508 = vmatprep.subr.mxu0 %v1933_v15  ;;  %1734 = vmatprep.subr.mxu1 %v1933_v15 }
 0x31d   : > { %1509 = vmatpush2.msra.mxu0 %v1457_v41  ;;  %1766 = vmatpush2.msra.mxu1 %v1457_v41  ;;  %v1449_v41 = vld [vmem:[%s3266_s6 + $0x88] sm:$0xff] }
 0x31e   : > { %1791 = vpow2.f32 %v1215_v24  ;;  %1510 = vmatprep.subr.mxu0 %v1933_v15  ;;  %1735 = vmatprep.subr.mxu1 %v1933_v15 }
 0x31f   : > { %1793 = vpow2.f32 %v1217_v32  ;;  %1511 = vmatpush2.msra.mxu0 %v1456_v48  ;;  %1767 = vmatpush2.msra.mxu1 %v1456_v48 }
 0x320   : > { %1512 = vmatprep.subr.mxu0 %v1933_v15  ;;  %1736 = vmatprep.subr.mxu1 %v1933_v15 }
 0x327   : > { %v2963_v18 = vpop.eup %1787 }
 0x328   : > { %v2965_v62 = vpop.eup %1789 }
 0x329   : > { %v1279_v34 = vadd.f32 %v2965_v62, %v2963_v18 }
 0x32b   : > { %v2969_v39 = vpop.eup %1791  ;;  %1280 = vadd.xlane.f32.xlu0 %v1279_v34 }
 0x32c   : > { %v2971_v40 = vpop.eup %1793 }
 0x32d   : > { %v1282_v2 = vadd.f32 %v2971_v40, %v2969_v39 }
 0x32f   : > { %1283 = vadd.xlane.f32.xlu1 %v1282_v2  ;;  %v1450_v2 = vld [vmem:[%s3266_s6 + $0x90] sm:$0xff] }
 0x339   : > { %v1155_v42 = vpop.xlane.xlu0 %1154 }
 0x33a   : > { %v1195_v54 = vsub.f32 %v2731_v29, %v1155_v42  ;;  %v1196_v47 = vsub.f32 %v2734_v31, %v1155_v42  ;;  %v1455_v29 = vld [vmem:[%s3266_s6 + $0xb8] sm:$0xff] }
 0x33b   : > { %1513 = vmatpush2.msra.mxu0 %v1455_v29  ;;  %1768 = vmatpush2.msra.mxu1 %v1455_v29 }
 0x33c   : > { %v1247_v58 = vmul.f32 1.442695, %v1195_v54  ;;  %v1249_v51 = vmul.f32 1.442695, %v1196_v47  ;;  %1514 = vmatprep.subr.mxu0 %v1933_v15  ;;  %1737 = vmatprep.subr.mxu1 %v1933_v15 }
 0x33d   : > { %v1158_v31 = vpop.xlane.xlu1 %1157  ;;  %v1134_v53 = vpop.xlane.xlu0 %1133  ;;  %1515 = vmatpush2.msra.mxu0 %v1454_v60  ;;  %1769 = vmatpush2.msra.mxu1 %v1454_v60 }
 0x33e   : > { %1795 = vpow2.f32 %v1247_v58  ;;  %v1197_v23 = vsub.f32 %v2745_v36, %v1158_v31  ;;  %v1198_v55 = vsub.f32 %v2748_v37, %v1158_v31  ;;  %v1181_v5 = vsub.f32 %v2742_v35, %v1134_v53  ;;  %1516 = vmatprep.subr.mxu0 %v1933_v15  ;;  %1738 = vmatprep.subr.mxu1 %v1933_v15 }
 0x33f   : > { %1797 = vpow2.f32 %v1249_v51  ;;  %v1182_v61 = vsub.f32 %v2737_v33, %v1134_v53  ;;  %1517 = vmatpush2.msra.mxu0 %v1453_v9  ;;  %1770 = vmatpush2.msra.mxu1 %v1453_v9 }
 0x340   : > { %v1251_v63 = vmul.f32 1.442695, %v1197_v23  ;;  %v1253_v8 = vmul.f32 1.442695, %v1198_v55  ;;  %v1219_v36 = vmul.f32 1.442695, %v1181_v5  ;;  %1518 = vmatprep.subr.mxu0 %v1933_v15  ;;  %1739 = vmatprep.subr.mxu1 %v1933_v15 }
 0x341   : > { %v1221_v35 = vmul.f32 1.442695, %v1182_v61  ;;  %v1161_v37 = vpop.xlane.xlu1 %1160  ;;  %v1137_v10 = vpop.xlane.xlu0 %1136  ;;  %1519 = vmatpush2.msra.mxu0 %v1452_v14  ;;  %1771 = vmatpush2.msra.mxu1 %v1452_v14 }
 0x342   : > { %1799 = vpow2.f32 %v1251_v63  ;;  %v1199_v13 = vsub.f32 %v2761_v45, %v1161_v37  ;;  %v1200_v33 = vsub.f32 %v2764_v19, %v1161_v37  ;;  %v1183_v30 = vsub.f32 %v2758_v43, %v1137_v10  ;;  %1520 = vmatprep.subr.mxu0 %v1933_v15  ;;  %1740 = vmatprep.subr.mxu1 %v1933_v15 }
 0x343   : > { %1801 = vpow2.f32 %v1253_v8  ;;  %v1184_v44 = vsub.f32 %v2751_v12, %v1137_v10  ;;  %v1451_v12 = vld [vmem:[%s3266_s6 + $0x98] sm:$0xff] }
 0x344   : > { %1803 = vpow2.f32 %v1219_v36  ;;  %v1255_v11 = vmul.f32 1.442695, %v1199_v13  ;;  %v1257_v45 = vmul.f32 1.442695, %v1200_v33  ;;  %v1223_v25 = vmul.f32 1.442695, %v1183_v30  ;;  %1521 = vmatpush2.msra.mxu0 %v1451_v12  ;;  %1772 = vmatpush2.msra.mxu1 %v1451_v12 }
 0x345   : > { %1805 = vpow2.f32 %v1221_v35  ;;  %v1225_v43 = vmul.f32 1.442695, %v1184_v44  ;;  %v1164_v19 = vpop.xlane.xlu1 %1163  ;;  %v1140_v1 = vpop.xlane.xlu0 %1139  ;;  %1522 = vmatprep.subr.mxu0 %v1933_v15  ;;  %1741 = vmatprep.subr.mxu1 %v1933_v15 }
 0x346   : > { %1807 = vpow2.f32 %v1255_v11  ;;  %v1201_v24 = vsub.f32 %v2777_v49, %v1164_v19  ;;  %v1202_v32 = vsub.f32 %v2780_v50, %v1164_v19  ;;  %v1185_v34 = vsub.f32 %v2774_v16, %v1140_v1  ;;  %1523 = vmatpush2.msra.mxu0 %v1450_v2  ;;  %1773 = vmatpush2.msra.mxu1 %v1450_v2 }
 0x347   : > { %1809 = vpow2.f32 %v1257_v45  ;;  %v1186_v3 = vsub.f32 %v2767_v46, %v1140_v1  ;;  %1524 = vmatprep.subr.mxu0 %v1933_v15  ;;  %v1448_v46 = vld [vmem:[%s3266_s6 + $0x80] sm:$0xff]  ;;  %1742 = vmatprep.subr.mxu1 %v1933_v15 }
 0x348   : > { %1811 = vpow2.f32 %v1223_v25  ;;  %v1259_v49 = vmul.f32 1.442695, %v1201_v24  ;;  %v1261_v16 = vmul.f32 1.442695, %v1202_v32  ;;  %v1227_v50 = vmul.f32 1.442695, %v1185_v34  ;;  %1525 = vmatpush2.msra.mxu0 %v1449_v41  ;;  %1774 = vmatpush2.msra.mxu1 %v1449_v41 }
 0x349   : > { %1813 = vpow2.f32 %v1225_v43  ;;  %v1229_v42 = vmul.f32 1.442695, %v1186_v3  ;;  %v1167_v54 = vpop.xlane.xlu1 %1166  ;;  %v1143_v47 = vpop.xlane.xlu0 %1142  ;;  %1526 = vmatprep.subr.mxu0 %v1933_v15  ;;  %1743 = vmatprep.subr.mxu1 %v1933_v15 }
 0x34a   : > { %1815 = vpow2.f32 %v1259_v49  ;;  %v1203_v48 = vsub.f32 %v2793_v57, %v1167_v54  ;;  %v1204_v58 = vsub.f32 %v2796_v59, %v1167_v54  ;;  %v1187_v51 = vsub.f32 %v2790_v56, %v1143_v47  ;;  %1527 = vmatpush2.msra.mxu0 %v1448_v46  ;;  %1775 = vmatpush2.msra.mxu1 %v1448_v46 }
 0x34b   : > { %v3043_v29 = vpop.eup %1795  ;;  %1817 = vpow2.f32 %v1261_v16  ;;  %v1188_v31 = vsub.f32 %v2783_v52, %v1143_v47 }
 0x34c   : > { %v3048_v53 = vpop.eup %1797  ;;  %1819 = vpow2.f32 %v1227_v50  ;;  %v1263_v23 = vmul.f32 1.442695, %v1203_v48  ;;  %v1265_v57 = vmul.f32 1.442695, %v1204_v58  ;;  %v1231_v55 = vmul.f32 1.442695, %v1187_v51 }
 0x34d   : > { %1821 = vpow2.f32 %v1229_v42  ;;  %v1233_v56 = vmul.f32 1.442695, %v1188_v31  ;;  %v1170_v59 = vpop.xlane.xlu1 %1169  ;;  %v1146_v5 = vpop.xlane.xlu0 %1145  ;;  %v1306_v60 = vadd.f32 %v3048_v53, %v3043_v29 }
 0x34e   : > { %1823 = vpow2.f32 %v1263_v23  ;;  %v1205_v52 = vsub.f32 %v2809_v21, %v1170_v59  ;;  %v1206_v15 = vsub.f32 %v2812_v22, %v1170_v59  ;;  %v1189_v61 = vsub.f32 %v2806_v0, %v1146_v5 }
 0x34f   : > { %v3055_v63 = vpop.eup %1799  ;;  %1825 = vpow2.f32 %v1265_v57  ;;  %v1190_v8 = vsub.f32 %v2799_v20, %v1146_v5  ;;  %1307 = vadd.xlane.f32.xlu0 %v1306_v60 }
 0x350   : > { %v3058_v36 = vpop.eup %1801  ;;  %1827 = vpow2.f32 %v1231_v55  ;;  %v1267_v35 = vmul.f32 1.442695, %v1205_v52  ;;  %v1269_v37 = vmul.f32 1.442695, %v1206_v15  ;;  %v1235_v10 = vmul.f32 1.442695, %v1189_v61 }
 0x351   : > { %v3060_v9 = vpop.eup %1803  ;;  %1829 = vpow2.f32 %v1233_v56  ;;  %v1237_v21 = vmul.f32 1.442695, %v1190_v8  ;;  %v1173_v13 = vpop.xlane.xlu1 %1172  ;;  %v1309_v0 = vadd.f32 %v3058_v36, %v3055_v63 }
 0x352   : > { %v1149_v22 = vpop.xlane.xlu0 %1148  ;;  %v3064_v33 = vpop.eup %1805  ;;  %1831 = vpow2.f32 %v1267_v35  ;;  %v1207_v20 = vsub.f32 %v2825_v7, %v1173_v13  ;;  %v1208_v30 = vsub.f32 %v2828_v28, %v1173_v13 }
 0x353   : > { %v1191_v14 = vsub.f32 %v2822_v27, %v1149_v22  ;;  %v3069_v44 = vpop.eup %1807  ;;  %1833 = vpow2.f32 %v1269_v37  ;;  %v1192_v11 = vsub.f32 %v2815_v6, %v1149_v22  ;;  %1310 = vadd.xlane.f32.xlu0 %v1309_v0  ;;  %v1285_v45 = vadd.f32 %v3064_v33, %v3060_v9 }
 0x354   : > { %v3074_v25 = vpop.eup %1809  ;;  %1835 = vpow2.f32 %v1235_v10  ;;  %v1271_v43 = vmul.f32 1.442695, %v1207_v20  ;;  %v1273_v19 = vmul.f32 1.442695, %v1208_v30 }
 0x355   : > { %v1239_v1 = vmul.f32 1.442695, %v1191_v14  ;;  %v3076_v7 = vpop.eup %1811  ;;  %1837 = vpow2.f32 %v1237_v21  ;;  %v1241_v28 = vmul.f32 1.442695, %v1192_v11  ;;  %1286 = vadd.xlane.f32.xlu1 %v1285_v45  ;;  %v1176_v27 = vpop.xlane.xlu1 %1175  ;;  %v1312_v6 = vadd.f32 %v3074_v25, %v3069_v44 }
 0x356   : > { %v1152_v12 = vpop.xlane.xlu0 %1151  ;;  %v3080_v24 = vpop.eup %1813  ;;  %1839 = vpow2.f32 %v1271_v43  ;;  %v1209_v32 = vsub.f32 %v2843_v4, %v1176_v27  ;;  %v1210_v34 = vsub.f32 %v2846_v26, %v1176_v27 }
 0x357   : > { %v1193_v2 = vsub.f32 %v2840_v17, %v1152_v12  ;;  %v3085_v3 = vpop.eup %1815  ;;  %1841 = vpow2.f32 %v1273_v19  ;;  %v1194_v41 = vsub.f32 %v2832_v38, %v1152_v12  ;;  %1313 = vadd.xlane.f32.xlu0 %v1312_v6  ;;  %v1288_v49 = vadd.f32 %v3080_v24, %v3076_v7  ;;  %v1890_v6 = vld [vmem:[%s2573_s21 + $0x8] sm:$0xff] }
 0x358   : > { %v3090_v16 = vpop.eup %1817  ;;  %1843 = vpow2.f32 %v1239_v1  ;;  %v1275_v50 = vmul.f32 1.442695, %v1209_v32  ;;  %v1277_v42 = vmul.f32 1.442695, %v1210_v34 }
 0x359   : > { %v1243_v54 = vmul.f32 1.442695, %v1193_v2  ;;  %v3092_v4 = vpop.eup %1819  ;;  %1845 = vpow2.f32 %v1241_v28  ;;  %v1245_v26 = vmul.f32 1.442695, %v1194_v41  ;;  %1289 = vadd.xlane.f32.xlu1 %v1288_v49  ;;  %v1315_v17 = vadd.f32 %v3090_v16, %v3085_v3  ;;  %v1889_v28 = vld [vmem:[%s2573_s21] sm:$0xff]  ;;  %v1891_v41 = vld [vmem:[%s2573_s21 + $0x18] sm:$0xff] }
 0x35a   : > { %v3096_v47 = vpop.eup %1821  ;;  %1847 = vpow2.f32 %v1275_v50  ;;  %v1892_v50 = vld [vmem:[%s2573_s21 + $0x10] sm:$0xff] }
 0x35b   : > { %v3098_v38 = vpop.eup %1823  ;;  %1849 = vpow2.f32 %v1277_v42  ;;  %1316 = vadd.xlane.f32.xlu0 %v1315_v17  ;;  %v1291_v46 = vadd.f32 %v3096_v47, %v3092_v4 }
 0x35c   : > { %v3102_v48 = vpop.eup %1825  ;;  %1851 = vpow2.f32 %v1243_v54 }
 0x35d   : > { %v3104_v58 = vpop.eup %1827  ;;  %1853 = vpow2.f32 %v1245_v26  ;;  %1292 = vadd.xlane.f32.xlu1 %v1291_v46  ;;  %v1318_v51 = vadd.f32 %v3102_v48, %v3098_v38 }
 0x35e   : > { %v3108_v31 = vpop.eup %1829 }
 0x35f   : > { %v3110_v23 = vpop.eup %1831  ;;  %1319 = vadd.xlane.f32.xlu0 %v1318_v51  ;;  %v1294_v57 = vadd.f32 %v3108_v31, %v3104_v58 }
 0x360   : > { %v3114_v55 = vpop.eup %1833 }
 0x361   : > { %v3116_v56 = vpop.eup %1835  ;;  %1295 = vadd.xlane.f32.xlu1 %v1294_v57  ;;  %v1321_v59 = vadd.f32 %v3114_v55, %v3110_v23 }
 0x362   : > { %v3120_v5 = vpop.eup %1837 }
 0x363   : > { %v3122_v60 = vpop.eup %1839  ;;  %1322 = vadd.xlane.f32.xlu0 %v1321_v59  ;;  %v1297_v52 = vadd.f32 %v3120_v5, %v3116_v56 }
 0x364   : > { %v3126_v15 = vpop.eup %1841 }
 0x365   : > { %v3128_v61 = vpop.eup %1843  ;;  %1298 = vadd.xlane.f32.xlu1 %v1297_v52  ;;  %v1324_v8 = vadd.f32 %v3126_v15, %v3122_v60 }
 0x366   : > { %v3132_v35 = vpop.eup %1845 }
 0x367   : > { %v3134_v37 = vpop.eup %1847  ;;  %1325 = vadd.xlane.f32.xlu0 %v1324_v8  ;;  %v1300_v10 = vadd.f32 %v3132_v35, %v3128_v61 }
 0x368   : > { %v3138_v21 = vpop.eup %1849 }
 0x369   : > { %v3140_v13 = vpop.eup %1851  ;;  %1301 = vadd.xlane.f32.xlu1 %v1300_v10  ;;  %v1327_v22 = vadd.f32 %v3138_v21, %v3134_v37 }
 0x36a   : > { %v3144_v0 = vpop.eup %1853 }
 0x36b   : > { %1328 = vadd.xlane.f32.xlu0 %v1327_v22  ;;  %v1303_v20 = vadd.f32 %v3144_v0, %v3140_v13  ;;  %v1893_v22 = vld [vmem:[%s2573_s21 + $0x90] sm:$0xff] }
 0x36d   : > { %1304 = vadd.xlane.f32.xlu1 %v1303_v20 }
 0x3b4   : > { %v1281_v30 = vpop.xlane.xlu0 %1280 }
 0x3b5   : > { %1855 = vrcp.f32 %v1281_v30 }
 0x3b8   : > { %v1284_v14 = vpop.xlane.xlu1 %1283 }
 0x3b9   : > { %1857 = vrcp.f32 %v1284_v14  ;;  %v1894_v14 = vld [vmem:[%s2573_s21 + $0x98] sm:$0xff] }
 0x3c2   : > { %v1856_v11 = vpop.eup %1855 }
 0x3c3   : > { %v1347_v45 = vmul.f32 32.0, %v1856_v11 }
 0x3c5   : > { %v1364_v43 = vmul.f32 %v2963_v18, %v1347_v45  ;;  %v1365_v19 = vmul.f32 %v2965_v62, %v1347_v45 }
 0x3c6   : > { %v1858_v1 = vpop.eup %1857 }
 0x3c7   : > { %v1398_v27 = vmul.f32 %v1889_v28, %v1364_v43  ;;  %v1348_v12 = vmul.f32 32.0, %v1858_v1  ;;  %v1399_v32 = vmul.f32 %v1890_v6, %v1365_v19  ;;  %v1895_v6 = vld [vmem:[%s2573_s21 + $0xa8] sm:$0xff] }
 0x3c9   : > { %1528 = vmatprep.mubr.f32.mxu0 %v1399_v32  ;;  %v1367_v34 = vmul.f32 %v2971_v40, %v1348_v12  ;;  %v1366_v2 = vmul.f32 %v2969_v39, %v1348_v12 }
 0x3ca   : > { %1529 = vmatmul.mubr.f32.vlgmr.msra.gmra.mxu0 %v1398_v27 }
 0x3cb   : > { %v1401_v49 = vmul.f32 %v1891_v41, %v1367_v34  ;;  %v1400_v42 = vmul.f32 %v1892_v50, %v1366_v2 }
 0x3cd   : > { %1533 = vmatprep.mubr.f32.mxu0 %v1401_v49  ;;  %v1896_v49 = vld [vmem:[%s2573_s21 + $0xa0] sm:$0xff] }
 0x3ce   : > { %1534 = vmatmul.mubr.f32.gmra.mxu0 %v1400_v42 }
 0x3d8   : > { %v1308_v18 = vpop.xlane.xlu0 %1307 }
 0x3d9   : > { %1859 = vrcp.f32 %v1308_v18 }
 0x3dc   : > { %v1311_v62 = vpop.xlane.xlu0 %1310 }
 0x3dd   : > { %1861 = vrcp.f32 %v1311_v62 }
 0x3de   : > { %v1287_v54 = vpop.xlane.xlu1 %1286 }
 0x3df   : > { %1863 = vrcp.f32 %v1287_v54  ;;  %v1898_v54 = vld [vmem:[%s2573_s21 + $0x20] sm:$0xff] }
 0x3e0   : > { %v1314_v26 = vpop.xlane.xlu0 %1313 }
 0x3e1   : > { %1865 = vrcp.f32 %v1314_v26 }
 0x3e2   : > { %v1290_v17 = vpop.xlane.xlu1 %1289 }
 0x3e3   : > { %1867 = vrcp.f32 %v1290_v17 }
 0x3e4   : > { %v1317_v40 = vpop.xlane.xlu0 %1316 }
 0x3e5   : > { %1869 = vrcp.f32 %v1317_v40 }
 0x3e6   : > { %v1860_v39 = vpop.eup %1859  ;;  %v1293_v46 = vpop.xlane.xlu1 %1292 }
 0x3e7   : > { %v1356_v51 = vmul.f32 32.0, %v1860_v39  ;;  %1871 = vrcp.f32 %v1293_v46  ;;  %v1899_v39 = vld [vmem:[%s2573_s21 + $0xb8] sm:$0xff] }
 0x3e8   : > { %v1320_v57 = vpop.xlane.xlu0 %1319 }
 0x3e9   : > { %v1382_v59 = vmul.f32 %v3043_v29, %v1356_v51  ;;  %1873 = vrcp.f32 %v1320_v57  ;;  %v1383_v52 = vmul.f32 %v3048_v53, %v1356_v51 }
 0x3ea   : > { %v1862_v8 = vpop.eup %1861  ;;  %v1296_v10 = vpop.xlane.xlu1 %1295 }
 0x3eb   : > { %v1416_v20 = vmul.f32 %v1893_v22, %v1382_v59  ;;  %v1357_v30 = vmul.f32 32.0, %v1862_v8  ;;  %1875 = vrcp.f32 %v1296_v10  ;;  %v1417_v11 = vmul.f32 %v1894_v14, %v1383_v52  ;;  %v1900_v59 = vld [vmem:[%s2573_s21 + $0xb0] sm:$0xff]  ;;  %v1901_v10 = vld [vmem:[%s2573_s21 + $0x38] sm:$0xff] }
 0x3ec   : > { %v1864_v45 = vpop.eup %1863  ;;  %v1323_v43 = vpop.xlane.xlu0 %1322 }
 0x3ed   : > { %v1349_v19 = vmul.f32 32.0, %v1864_v45  ;;  %1877 = vrcp.f32 %v1323_v43  ;;  %1573 = vmatprep.mubr.f32.mxu1 %v1417_v11  ;;  %v1385_v29 = vmul.f32 %v3058_v36, %v1357_v30  ;;  %v1384_v1 = vmul.f32 %v3055_v63, %v1357_v30  ;;  %v1897_v63 = vld [vmem:[%s2573_s21 + $0x28] sm:$0xff]  ;;  %v1902_v30 = vld [vmem:[%s2573_s21 + $0x30] sm:$0xff] }
 0x3ee   : > { %v1866_v53 = vpop.eup %1865  ;;  %v1299_v28 = vpop.xlane.xlu1 %1298  ;;  %1574 = vmatmul.mubr.f32.vlgmr.msra.gmra.mxu1 %v1416_v20  ;;  %v1903_v43 = vld [vmem:[%s2573_s21 + $0xc8] sm:$0xff] }
 0x3ef   : > { %v1358_v27 = vmul.f32 32.0, %v1866_v53  ;;  %1879 = vrcp.f32 %v1299_v28  ;;  %v1369_v12 = vmul.f32 %v3064_v33, %v1349_v19  ;;  %v1419_v32 = vmul.f32 %v1895_v6, %v1385_v29 }
 0x3f0   : > { %v1868_v34 = vpop.eup %1867  ;;  %v1326_v2 = vpop.xlane.xlu0 %1325  ;;  %v1368_v41 = vmul.f32 %v3060_v9, %v1349_v19  ;;  %v1418_v50 = vmul.f32 %v1896_v49, %v1384_v1  ;;  %v1904_v1 = vld [vmem:[%s2573_s21 + $0xc0] sm:$0xff] }
 0x3f1   : > { %v1350_v36 = vmul.f32 32.0, %v1868_v34  ;;  %1881 = vrcp.f32 %v1326_v2  ;;  %v1403_v42 = vmul.f32 %v1897_v63, %v1369_v12  ;;  %1578 = vmatprep.mubr.f32.mxu1 %v1419_v32  ;;  %v1387_v18 = vmul.f32 %v3074_v25, %v1358_v27  ;;  %v1906_v32 = vld [vmem:[%s2573_s21 + $0x40] sm:$0xff] }
 0x3f2   : > { %v1870_v62 = vpop.eup %1869  ;;  %v1302_v33 = vpop.xlane.xlu1 %1301  ;;  %v1402_v26 = vmul.f32 %v1898_v54, %v1368_v41  ;;  %1579 = vmatmul.mubr.f32.gmra.mxu1 %v1418_v50  ;;  %v1386_v17 = vmul.f32 %v3069_v44, %v1358_v27  ;;  %v1905_v27 = vld [vmem:[%s2573_s21 + $0x48] sm:$0xff]  ;;  %v1907_v41 = vld [vmem:[%s2573_s21 + $0xd8] sm:$0xff] }
 0x3f3   : > { %v1359_v9 = vmul.f32 32.0, %v1870_v62  ;;  %1883 = vrcp.f32 %v1302_v33  ;;  %1538 = vmatprep.mubr.f32.mxu0 %v1403_v42  ;;  %v1371_v40 = vmul.f32 %v3080_v24, %v1350_v36  ;;  %v1421_v46 = vmul.f32 %v1899_v39, %v1387_v18  ;;  %v1909_v42 = vld [vmem:[%s2573_s21 + $0x58] sm:$0xff]  ;;  %v1910_v62 = vld [vmem:[%s2573_s21 + $0x50] sm:$0xff] }
 0x3f4   : > { %v1872_v51 = vpop.eup %1871  ;;  %1539 = vmatmul.mubr.f32.gmra.mxu0 %v1402_v26  ;;  %v1329_v25 = vpop.xlane.xlu0 %1328  ;;  %v1370_v57 = vmul.f32 %v3076_v7, %v1350_v36  ;;  %v1420_v52 = vmul.f32 %v1900_v59, %v1386_v17 }
 0x3f5   : > { %v1351_v8 = vmul.f32 32.0, %v1872_v51  ;;  %1885 = vrcp.f32 %v1329_v25  ;;  %v1405_v44 = vmul.f32 %v1901_v10, %v1371_v40  ;;  %1583 = vmatprep.mubr.f32.mxu1 %v1421_v46  ;;  %v1389_v22 = vmul.f32 %v3090_v16, %v1359_v9  ;;  %v1912_v51 = vld [vmem:[%s2573_s21 + $0xe0] sm:$0xff] }
 0x3f6   : > { %v1874_v24 = vpop.eup %1873  ;;  %v1305_v20 = vpop.xlane.xlu1 %1304  ;;  %v1404_v14 = vmul.f32 %v1902_v30, %v1370_v57  ;;  %1584 = vmatmul.mubr.f32.gmra.mxu1 %v1420_v52  ;;  %v1388_v11 = vmul.f32 %v3085_v3, %v1359_v9  ;;  %v1911_v9 = vld [vmem:[%s2573_s21 + $0xe8] sm:$0xff]  ;;  %v1914_v52 = vld [vmem:[%s2573_s21 + $0x60] sm:$0xff] }
 0x3f7   : > { %v1360_v7 = vmul.f32 32.0, %v1874_v24  ;;  %1887 = vrcp.f32 %v1305_v20  ;;  %1543 = vmatprep.mubr.f32.mxu0 %v1405_v44  ;;  %v1373_v45 = vmul.f32 %v3096_v47, %v1351_v8  ;;  %v1423_v19 = vmul.f32 %v1903_v43, %v1389_v22  ;;  %v1915_v22 = vld [vmem:[%s2573_s21 + $0xf8] sm:$0xff] }
 0x3f8   : > { %v1876_v29 = vpop.eup %1875  ;;  %1544 = vmatmul.mubr.f32.gmra.mxu0 %v1404_v14  ;;  %v1372_v16 = vmul.f32 %v3092_v4, %v1351_v8  ;;  %v1422_v53 = vmul.f32 %v1904_v1, %v1388_v11  ;;  %v1916_v14 = vld [vmem:[%s2573_s21 + $0xf0] sm:$0xff] }
 0x3f9   : > { %v1352_v28 = vmul.f32 32.0, %v1876_v29  ;;  %v1407_v12 = vmul.f32 %v1905_v27, %v1373_v45  ;;  %1588 = vmatprep.mubr.f32.mxu1 %v1423_v19  ;;  %v1391_v3 = vmul.f32 %v3102_v48, %v1360_v7  ;;  %v1390_v6 = vmul.f32 %v3098_v38, %v1360_v7  ;;  %v1908_v48 = vld [vmem:[%s2573_s21 + $0xd0] sm:$0xff]  ;;  %v1917_v45 = vld [vmem:[%s2573_s21 + $0x78] sm:$0xff]  ;;  %v1922_v27 = vld [vmem:[%s2573_s21 + $0x80] sm:$0xff] }
 0x3fa   : > { %v1878_v47 = vpop.eup %1877  ;;  %v1406_v34 = vmul.f32 %v1906_v32, %v1372_v16  ;;  %1589 = vmatmul.mubr.f32.gmra.mxu1 %v1422_v53  ;;  %v1919_v16 = vld [vmem:[%s2573_s21 + $0x108] sm:$0xff]  ;;  %v1920_v53 = vld [vmem:[%s2573_s21 + $0x100] sm:$0xff] }
 0x3fb   : > { %v1361_v2 = vmul.f32 32.0, %v1878_v47  ;;  %1548 = vmatprep.mubr.f32.mxu0 %v1407_v12  ;;  %v1375_v4 = vmul.f32 %v3108_v31, %v1352_v28  ;;  %v1425_v49 = vmul.f32 %v1907_v41, %v1391_v3  ;;  %v1374_v50 = vmul.f32 %v3104_v58, %v1352_v28  ;;  %v1921_v28 = vld [vmem:[%s2573_s21 + $0x88] sm:$0xff] }
 0x3fc   : > { %v1880_v36 = vpop.eup %1879  ;;  %1549 = vmatmul.mubr.f32.gmra.mxu0 %v1406_v34  ;;  %v1424_v63 = vmul.f32 %v1908_v48, %v1390_v6 }
 0x3fd   : > { %v1353_v38 = vmul.f32 32.0, %v1880_v36  ;;  %v1409_v18 = vmul.f32 %v1909_v42, %v1375_v4  ;;  %1593 = vmatprep.mubr.f32.mxu1 %v1425_v49  ;;  %v1408_v33 = vmul.f32 %v1910_v62, %v1374_v50  ;;  %v1393_v54 = vmul.f32 %v3114_v55, %v1361_v2  ;;  %v1913_v55 = vld [vmem:[%s2573_s21 + $0x68] sm:$0xff] }
 0x3fe   : > { %v1882_v31 = vpop.eup %1881  ;;  %1594 = vmatmul.mubr.f32.gmra.mxu1 %v1424_v63  ;;  %v1392_v58 = vmul.f32 %v3110_v23, %v1361_v2 }
 0x3ff   : > { %v1362_v26 = vmul.f32 32.0, %v1882_v31  ;;  %1553 = vmatprep.mubr.f32.mxu0 %v1409_v18  ;;  %v1377_v17 = vmul.f32 %v3120_v5, %v1353_v38  ;;  %v1427_v40 = vmul.f32 %v1911_v9, %v1393_v54  ;;  %v1376_v39 = vmul.f32 %v3116_v56, %v1353_v38 }
 0x400   : > { %v1884_v46 = vpop.eup %1883  ;;  %1554 = vmatmul.mubr.f32.gmra.mxu0 %v1408_v33  ;;  %v1426_v25 = vmul.f32 %v1912_v51, %v1392_v58 }
 0x401   : > { %v1354_v57 = vmul.f32 32.0, %v1884_v46  ;;  %v1411_v59 = vmul.f32 %v1913_v55, %v1377_v17  ;;  %1598 = vmatprep.mubr.f32.mxu1 %v1427_v40  ;;  %v1410_v23 = vmul.f32 %v1914_v52, %v1376_v39  ;;  %v1395_v8 = vmul.f32 %v3126_v15, %v1362_v26 }
 0x402   : > { %v1886_v10 = vpop.eup %1885  ;;  %1599 = vmatmul.mubr.f32.gmra.mxu1 %v1426_v25  ;;  %v1394_v5 = vmul.f32 %v3122_v60, %v1362_v26 }
 0x403   : > { %v1363_v56 = vmul.f32 32.0, %v1886_v10  ;;  %1558 = vmatprep.mubr.f32.mxu0 %v1411_v59  ;;  %v1379_v44 = vmul.f32 %v3132_v35, %v1354_v57  ;;  %v1429_v24 = vmul.f32 %v1915_v22, %v1395_v8  ;;  %v1378_v20 = vmul.f32 %v3128_v61, %v1354_v57  ;;  %v1918_v35 = vld [vmem:[%s2573_s21 + $0x70] sm:$0xff] }
 0x404   : > { %v1888_v30 = vpop.eup %1887  ;;  %1559 = vmatmul.mubr.f32.gmra.mxu0 %v1410_v23  ;;  %v1428_v15 = vmul.f32 %v1916_v14, %v1394_v5 }
 0x405   : > { %v1355_v11 = vmul.f32 32.0, %v1888_v30  ;;  %v1396_v7 = vmul.f32 %v3134_v37, %v1363_v56  ;;  %v1397_v60 = vmul.f32 %v3138_v21, %v1363_v56  ;;  %v1413_v43 = vmul.f32 %v1917_v45, %v1379_v44  ;;  %1603 = vmatprep.mubr.f32.mxu1 %v1429_v24 }
 0x406   : > { %v1412_v19 = vmul.f32 %v1918_v35, %v1378_v20  ;;  %1604 = vmatmul.mubr.f32.gmra.mxu1 %v1428_v15 }
 0x407   : > { %v1380_v61 = vmul.f32 %v3140_v13, %v1355_v11  ;;  %v1381_v29 = vmul.f32 %v3144_v0, %v1355_v11  ;;  %1563 = vmatprep.mubr.f32.mxu0 %v1413_v43  ;;  %v1431_v1 = vmul.f32 %v1919_v16, %v1397_v60  ;;  %v1430_v37 = vmul.f32 %v1920_v53, %v1396_v7 }
 0x408   : > { %1564 = vmatmul.mubr.f32.gmra.mxu0 %v1412_v19 }
 0x409   : > { %v1415_v21 = vmul.f32 %v1921_v28, %v1381_v29  ;;  %1608 = vmatprep.mubr.f32.mxu1 %v1431_v1  ;;  %v1414_v12 = vmul.f32 %v1922_v27, %v1380_v61 }
 0x40a   : > { %1609 = vmatmul.mubr.f32.gmra.mxu1 %v1430_v37 }
 0x40b   : > { %1568 = vmatprep.mubr.f32.mxu0 %v1415_v21 }
 0x40c   : > { %1569 = vmatmul.mubr.f32.gmra.mxu0 %v1414_v12 }
 0x48a   : > { %v1530_v13 = vpop.f32.mrf.mxu0 }
 0x48b   : > { %1614 = vst.msk [vmem:[%s3221_s11] sm:$0xff] %vm478_vm0, %v1530_v13 }
 0x48c   : > { %v1532_v0 = vpop.f32.mrf.mxu0 }
 0x48e   : > { %v1535_v3 = vpop.f32.mrf.mxu0 }
 0x48f   : > { %1615 = vst.msk [vmem:[%s3221_s11 + $0x8] sm:$0xff] %vm478_vm0, %v1535_v3 }
 0x490   : > { %v1537_v6 = vpop.f32.mrf.mxu0 }
 0x4ae   : > { %v1575_v47 = vpop.f32.mrf.mxu1 }
 0x4af   : > { %1623 = vst.msk [vmem:[%s3221_s11 + $0x48] sm:$0xff] %vm478_vm0, %v1575_v47 }
 0x4b0   : > { %v1577_v32 = vpop.f32.mrf.mxu1 }
 0x4b2   : > { %v1580_v34 = vpop.f32.mrf.mxu1 }
 0x4b3   : > { %1624 = vst.msk [vmem:[%s3221_s11 + $0x50] sm:$0xff] %vm478_vm0, %v1580_v34 }
 0x4b4   : > { %v1540_v2 = vpop.f32.mrf.mxu0  ;;  %v1582_v4 = vpop.f32.mrf.mxu1 }
 0x4b5   : > { %1616 = vst.msk [vmem:[%s3221_s11 + $0x10] sm:$0xff] %vm478_vm0, %v1540_v2 }
 0x4b6   : > { %v1542_v41 = vpop.f32.mrf.mxu0  ;;  %v1585_v49 = vpop.f32.mrf.mxu1 }
 0x4b7   : > { %1625 = vst.msk [vmem:[%s3221_s11 + $0x58] sm:$0xff] %vm478_vm0, %v1585_v49 }
 0x4b8   : > { %v1545_v50 = vpop.f32.mrf.mxu0  ;;  %v1587_v36 = vpop.f32.mrf.mxu1 }
 0x4b9   : > { %1617 = vst.msk [vmem:[%s3221_s11 + $0x18] sm:$0xff] %vm478_vm0, %v1545_v50 }
 0x4ba   : > { %v1547_v48 = vpop.f32.mrf.mxu0  ;;  %v1590_v63 = vpop.f32.mrf.mxu1 }
 0x4bb   : > { %1626 = vst.msk [vmem:[%s3221_s11 + $0x60] sm:$0xff] %vm478_vm0, %v1590_v63 }
 0x4bc   : > { %v1550_v38 = vpop.f32.mrf.mxu0  ;;  %v1592_v42 = vpop.f32.mrf.mxu1 }
 0x4bd   : > { %1618 = vst.msk [vmem:[%s3221_s11 + $0x20] sm:$0xff] %vm478_vm0, %v1550_v38 }
 0x4be   : > { %v1552_v18 = vpop.f32.mrf.mxu0  ;;  %v1595_v62 = vpop.f32.mrf.mxu1 }
 0x4bf   : > { %1627 = vst.msk [vmem:[%s3221_s11 + $0x68] sm:$0xff] %vm478_vm0, %v1595_v62 }
 0x4c0   : > { %v1555_v33 = vpop.f32.mrf.mxu0  ;;  %v1597_v54 = vpop.f32.mrf.mxu1 }
 0x4c1   : > { %1619 = vst.msk [vmem:[%s3221_s11 + $0x28] sm:$0xff] %vm478_vm0, %v1555_v33 }
 0x4c2   : > { %v1557_v31 = vpop.f32.mrf.mxu0  ;;  %v1600_v58 = vpop.f32.mrf.mxu1 }
 0x4c3   : > { %1628 = vst.msk [vmem:[%s3221_s11 + $0x70] sm:$0xff] %vm478_vm0, %v1600_v58 }
 0x4c4   : > { %v1560_v26 = vpop.f32.mrf.mxu0  ;;  %v1602_v17 = vpop.f32.mrf.mxu1 }
 0x4c5   : > { %1620 = vst.msk [vmem:[%s3221_s11 + $0x30] sm:$0xff] %vm478_vm0, %v1560_v26 }
 0x4c6   : > { %v1562_v9 = vpop.f32.mrf.mxu0  ;;  %v1605_v40 = vpop.f32.mrf.mxu1 }
 0x4c7   : > { %1629 = vst.msk [vmem:[%s3221_s11 + $0x78] sm:$0xff] %vm478_vm0, %v1605_v40 }
 0x4c8   : > { %v1565_v39 = vpop.f32.mrf.mxu0  ;;  %v1607_v46 = vpop.f32.mrf.mxu1 }
 0x4c9   : > { %1621 = vst.msk [vmem:[%s3221_s11 + $0x38] sm:$0xff] %vm478_vm0, %v1565_v39 }
 0x4ca   : > { %v1567_v51 = vpop.f32.mrf.mxu0  ;;  %v1610_v25 = vpop.f32.mrf.mxu1 }
 0x4cb   : > { %1630 = vst.msk [vmem:[%s3221_s11 + $0x80] sm:$0xff] %vm478_vm0, %v1610_v25 }
 0x4cc   : > { %v1570_v57 = vpop.f32.mrf.mxu0  ;;  %v1612_v55 = vpop.f32.mrf.mxu1 }
 0x4cd   : > { %1622 = vst.msk [vmem:[%s3221_s11 + $0x40] sm:$0xff] %vm478_vm0, %v1570_v57 }
 0x4ce   : > { %v1572_v59 = vpop.f32.mrf.mxu0 }
 0x4cf PF: > { %s19_s29 = sadd.s32 1, %s1929_s29  }
 0x4d0   : > { %p16_p4 = scmp.ge.s32.totalorder %s19_s29, 4  }
 0x4d2   :  { %18 = sbr.rel (!%p16_p4) target bundleno = 2 (0x2), region = 85 }

</bundles_post_ra>
